<compile_context>
chip_gen: v7x
topology: tpu7x:2x2x1
jax: 0.10.0
libtpu: 0.0.40
codegen_flags: <defaults>
</compile_context>

<pallas_src>
import jax
import jax.numpy as jnp
from jax.experimental import pallas as pl
from jax.experimental.pallas import tpu as pltpu

EPS = 1e-5
OUT_PAD = 128  # lane-dense padded width of the output head

# Packed parameter slab layout (rows of an (8, 512) f32 array):
#   row 0: gamma1 (512)      row 1: beta1 (512)
#   row 2: gamma2 (512)      row 3: beta2 (512)
#   row 4: gamma3 (256 pad)  row 5: beta3 (256 pad)
#   row 6: b4     (128 pad)  row 7: unused (zeros)


def _bn_relu(h, gamma, beta):
    """BatchNorm1d (training mode, biased var) + ReLU over batch axis 0.

    One-pass statistics (mean, E[h^2]) off the same f32 tile, then the affine
    is folded into a single scale/shift so the wide (B, W) tile only sees one
    mul and one add before the ReLU."""
    mean = jnp.mean(h, axis=0, keepdims=True)
    msq = jnp.mean(h * h, axis=0, keepdims=True)
    var = jnp.maximum(msq - mean * mean, 0.0)
    inv = jax.lax.rsqrt(var + EPS)
    scale = gamma * inv                 # (1, W) row work only
    shift = beta - mean * scale         # (1, W)
    return jnp.maximum(h * scale + shift, 0.0)


def dqn_kernel(
    x_ref, w1_ref, slab_ref,            # auto-DMA'd VMEM inputs
    w2_hbm, w3_hbm, w4_hbm,             # raw HBM refs (memory_space=pl.ANY)
    out_ref,                            # output
    w2_buf, w3_buf, w4_buf, sem,        # VMEM scratch + DMA semaphores
):
    # Kick off the later-layer weight DMAs immediately; wait only right before
    # the dot that consumes each one so the copies overlap layer 1-3 compute.
    cp2 = pltpu.make_async_copy(w2_hbm, w2_buf, sem.at[0])
    cp3 = pltpu.make_async_copy(w3_hbm, w3_buf, sem.at[1])
    cp4 = pltpu.make_async_copy(w4_hbm, w4_buf, sem.at[2])
    cp2.start()
    cp3.start()
    cp4.start()

    # Layer 1: Linear(in, 512) -> BN -> ReLU   (Linear bias cancelled by BN)
    x = x_ref[...].astype(jnp.bfloat16)        # f32 -> bf16 cast done in-kernel
    h = jnp.dot(x, w1_ref[...], preferred_element_type=jnp.float32)
    h = _bn_relu(h, slab_ref[0:1, :], slab_ref[1:2, :])

    # Layer 2: Linear(512, 512) -> BN -> ReLU
    cp2.wait()
    h = jnp.dot(h.astype(jnp.bfloat16), w2_buf[...],
                preferred_element_type=jnp.float32)
    h = _bn_relu(h, slab_ref[2:3, :], slab_ref[3:4, :])

    # Layer 3: Linear(512, 256) -> BN -> ReLU
    cp3.wait()
    h = jnp.dot(h.astype(jnp.bfloat16), w3_buf[...],
                preferred_element_type=jnp.float32)
    h = _bn_relu(h, slab_ref[4:5, :256], slab_ref[5:6, :256])

    # Output head: Linear(256, OUT_PAD)  (zero-padded to 128 lanes)
    cp4.wait()
    out = jnp.dot(h.astype(jnp.bfloat16), w4_buf[...],
                  preferred_element_type=jnp.float32)
    out_ref[...] = (out + slab_ref[6:7, :OUT_PAD]).astype(out_ref.dtype)


def dqn_forward(x, params):
    """x: (B, input_size) f32.  Returns padded (B, OUT_PAD) f32 Q-values;
    valid values live in the first `output_size` lanes."""
    B, in_dim = x.shape
    args = (x, params["w1"], params["slab"],
            params["w2"], params["w3"], params["w4"])

    vmem = pl.BlockSpec(memory_space=pltpu.MemorySpace.VMEM)
    hbm = pl.BlockSpec(memory_space=pl.ANY)

    flops = 2 * B * (in_dim * 512 + 512 * 512 + 512 * 256 + 256 * OUT_PAD)
    bytes_accessed = (sum(a.size * a.dtype.itemsize for a in args)
                      + B * OUT_PAD * 4)
    cost = pl.CostEstimate(
        flops=flops,
        transcendentals=512 + 512 + 256,   # rsqrt per BN feature
        bytes_accessed=bytes_accessed,
    )

    return pl.pallas_call(
        dqn_kernel,
        out_shape=jax.ShapeDtypeStruct((B, OUT_PAD), jnp.float32),
        in_specs=[vmem, vmem, vmem, hbm, hbm, hbm],
        out_specs=vmem,
        scratch_shapes=[
            pltpu.VMEM((512, 512), jnp.bfloat16),      # w2 landing buffer
            pltpu.VMEM((512, 256), jnp.bfloat16),      # w3 landing buffer
            pltpu.VMEM((256, OUT_PAD), jnp.bfloat16),  # w4 landing buffer
            pltpu.SemaphoreType.DMA((3,)),
        ],
        compiler_params=pltpu.CompilerParams(vmem_limit_bytes=8 * 1024 * 1024),
        cost_estimate=cost,
    )(*args)


def init_params(key, input_size, output_size):
    """Deterministic synthetic init (shapes match the PyTorch module).

    Linear weights are stored pre-transposed (in_features, out_features) in
    bf16.  Biases of the three BN-followed Linears are omitted (exactly
    cancelled by the batch-mode BN mean subtraction).  All small per-feature
    params (BN gamma/beta + head bias b4) are packed into one (8, 512) f32
    slab so the kernel takes a single small DMA for them."""
    dims = [(input_size, 512), (512, 512), (512, 256), (256, output_size)]
    keys = jax.random.split(key, 16)
    ki = 0
    params = {}
    b4 = None
    for idx, (fin, fout) in enumerate(dims, start=1):
        scale = 1.0 / jnp.sqrt(jnp.float32(fin))
        w = jax.random.uniform(keys[ki], (fin, fout), jnp.float32, -1.0, 1.0) * scale
        ki += 1
        b = jax.random.uniform(keys[ki], (1, fout), jnp.float32, -1.0, 1.0) * scale
        ki += 1
        if idx == 4:
            w = jnp.pad(w, ((0, 0), (0, OUT_PAD - fout)))
            b4 = jnp.pad(b, ((0, 0), (0, OUT_PAD - fout)))
        params[f"w{idx}"] = w.astype(jnp.bfloat16)
        # b1..b3 intentionally not stored (cancelled by BatchNorm).

    bn = {}
    for idx, width in [(1, 512), (2, 512), (3, 256)]:
        bn[f"g{idx}"] = 1.0 + 0.1 * jax.random.normal(keys[ki], (1, width), jnp.float32)
        ki += 1
        bn[f"be{idx}"] = 0.1 * jax.random.normal(keys[ki], (1, width), jnp.float32)
        ki += 1

    def row(v):
        return jnp.pad(v, ((0, 0), (0, 512 - v.shape[1])))

    slab = jnp.concatenate([
        row(bn["g1"]), row(bn["be1"]),
        row(bn["g2"]), row(bn["be2"]),
        row(bn["g3"]), row(bn["be3"]),
        row(b4),
        jnp.zeros((1, 512), jnp.float32),
    ], axis=0)                                    # (8, 512) f32
    params["slab"] = slab
    # Unpacked copies kept only for the pure-JAX reference / tests.
    params["bn"] = bn
    params["b4"] = b4
    return params


def dqn_reference(x, params):
    """Pure-JAX reference using the same bf16 matmul inputs / f32 accumulation."""
    def bn_relu(h, g, b):
        m = jnp.mean(h, axis=0, keepdims=True)
        v = jnp.maximum(jnp.mean(h * h, axis=0, keepdims=True) - m * m, 0.0)
        inv = jax.lax.rsqrt(v + EPS)
        scale = g * inv
        shift = b - m * scale
        return jnp.maximum(h * scale + shift, 0.0)

    h = jnp.dot(x.astype(jnp.bfloat16), params["w1"],
                preferred_element_type=jnp.float32)
    h = bn_relu(h, params["bn"]["g1"], params["bn"]["be1"])
    h = jnp.dot(h.astype(jnp.bfloat16), params["w2"],
                preferred_element_type=jnp.float32)
    h = bn_relu(h, params["bn"]["g2"], params["bn"]["be2"])
    h = jnp.dot(h.astype(jnp.bfloat16), params["w3"],
                preferred_element_type=jnp.float32)
    h = bn_relu(h, params["bn"]["g3"], params["bn"]["be3"])
    out = jnp.dot(h.astype(jnp.bfloat16), params["w4"],
                  preferred_element_type=jnp.float32) + params["b4"]
    return out                                   # padded (B, OUT_PAD)


if __name__ == "__main__":
    key = jax.random.PRNGKey(0)
    k_x, k_p = jax.random.split(key)

    B, INPUT_SIZE, OUTPUT_SIZE = 8, 32, 4
    x = jax.random.normal(k_x, (B, INPUT_SIZE), jnp.float32)
    params = init_params(k_p, INPUT_SIZE, OUTPUT_SIZE)

    fwd = jax.jit(dqn_forward)
    out_padded = jax.block_until_ready(fwd(x, params))

    ref_padded = dqn_reference(x, params)
    assert out_padded.shape == (B, OUT_PAD), out_padded.shape
    assert jnp.allclose(out_padded, ref_padded, atol=1e-2, rtol=1e-2), (
        float(jnp.max(jnp.abs(out_padded - ref_padded)))
    )
    out = out_padded[:, :OUTPUT_SIZE]            # consumer-side slice (test only)
    assert out.shape == (B, OUTPUT_SIZE), out.shape
    print("KERNEL_OK")
</pallas_src>

<mosaic_0001>
module attributes {stable_mosaic.version = 11 : i64} {
  func.func @dqn_kernel(%arg0: memref<8x32xf32, #tpu.memory_space<vmem>>, %arg1: memref<32x512xbf16, #tpu.memory_space<vmem>>, %arg2: memref<8x512xf32, #tpu.memory_space<vmem>>, %arg3: memref<512x512xbf16, #tpu.memory_space<any>>, %arg4: memref<512x256xbf16, #tpu.memory_space<any>>, %arg5: memref<256x128xbf16, #tpu.memory_space<any>>, %arg6: memref<8x128xf32, #tpu.memory_space<vmem>>, %arg7: memref<512x512xbf16, #tpu.memory_space<vmem>>, %arg8: memref<512x256xbf16, #tpu.memory_space<vmem>>, %arg9: memref<256x128xbf16, #tpu.memory_space<vmem>>, %arg10: memref<3x!tpu.dma_semaphore, #tpu.memory_space<semaphore_mem>>) attributes {dimension_semantics = [], scalar_prefetch = 0 : i64, scratch_operands = 4 : i64, tpu.core_type = #tpu.core_type<tc>} {
    %c0_i32 = arith.constant 0 : i32
    %0 = tpu.memref_slice %arg10[%c0_i32] : memref<3x!tpu.dma_semaphore, #tpu.memory_space<semaphore_mem>> -> memref<1x!tpu.dma_semaphore, #tpu.memory_space<semaphore_mem>>
    %1 = tpu.memref_squeeze %0 : memref<1x!tpu.dma_semaphore, #tpu.memory_space<semaphore_mem>> -> memref<!tpu.dma_semaphore, #tpu.memory_space<semaphore_mem>>
    tpu.enqueue_dma source(%arg3 : memref<512x512xbf16, #tpu.memory_space<any>>) target(%arg7 : memref<512x512xbf16, #tpu.memory_space<vmem>>) target_semaphore(%1 : memref<!tpu.dma_semaphore, #tpu.memory_space<semaphore_mem>>)
    %c1_i32 = arith.constant 1 : i32
    %2 = tpu.memref_slice %arg10[%c1_i32] : memref<3x!tpu.dma_semaphore, #tpu.memory_space<semaphore_mem>> -> memref<1x!tpu.dma_semaphore, #tpu.memory_space<semaphore_mem>>
    %3 = tpu.memref_squeeze %2 : memref<1x!tpu.dma_semaphore, #tpu.memory_space<semaphore_mem>> -> memref<!tpu.dma_semaphore, #tpu.memory_space<semaphore_mem>>
    tpu.enqueue_dma source(%arg4 : memref<512x256xbf16, #tpu.memory_space<any>>) target(%arg8 : memref<512x256xbf16, #tpu.memory_space<vmem>>) target_semaphore(%3 : memref<!tpu.dma_semaphore, #tpu.memory_space<semaphore_mem>>)
    %c2_i32 = arith.constant 2 : i32
    %4 = tpu.memref_slice %arg10[%c2_i32] : memref<3x!tpu.dma_semaphore, #tpu.memory_space<semaphore_mem>> -> memref<1x!tpu.dma_semaphore, #tpu.memory_space<semaphore_mem>>
    %5 = tpu.memref_squeeze %4 : memref<1x!tpu.dma_semaphore, #tpu.memory_space<semaphore_mem>> -> memref<!tpu.dma_semaphore, #tpu.memory_space<semaphore_mem>>
    tpu.enqueue_dma source(%arg5 : memref<256x128xbf16, #tpu.memory_space<any>>) target(%arg9 : memref<256x128xbf16, #tpu.memory_space<vmem>>) target_semaphore(%5 : memref<!tpu.dma_semaphore, #tpu.memory_space<semaphore_mem>>)
    %c0 = arith.constant 0 : index
    %c0_0 = arith.constant 0 : index
    %6 = vector.load %arg0[%c0, %c0_0] : memref<8x32xf32, #tpu.memory_space<vmem>>, vector<8x32xf32>
    %7 = arith.truncf %6 : vector<8x32xf32> to vector<8x32xbf16>
    %c0_1 = arith.constant 0 : index
    %c0_2 = arith.constant 0 : index
    %8 = vector.load %arg1[%c0_1, %c0_2] : memref<32x512xbf16, #tpu.memory_space<vmem>>, vector<32x512xbf16>
    %cst = arith.constant dense<0.000000e+00> : vector<8x512xf32>
    %9 = tpu.matmul %7, %8, %cst {dimension_numbers = #tpu.dot_dimension_numbers<[1], [0], [0], [1], [0, 0, 1, 1], [], []>} : vector<8x32xbf16>, vector<32x512xbf16>, vector<8x512xf32> -> vector<8x512xf32>
    %c0_3 = arith.constant 0 : index
    %c0_4 = arith.constant 0 : index
    %10 = vector.load %arg2[%c0_3, %c0_4] : memref<8x512xf32, #tpu.memory_space<vmem>>, vector<1x512xf32>
    %c1 = arith.constant 1 : index
    %c0_5 = arith.constant 0 : index
    %11 = vector.load %arg2[%c1, %c0_5] : memref<8x512xf32, #tpu.memory_space<vmem>>, vector<1x512xf32>
    %cst_6 = arith.constant dense<0.000000e+00> : vector<512xf32>
    %12 = vector.multi_reduction <add>, %9, %cst_6 [0] : vector<8x512xf32> to vector<512xf32>
    %13 = vector.shape_cast %12 : vector<512xf32> to vector<1x512xf32>
    %cst_7 = arith.constant 8.000000e+00 : f32
    %14 = vector.broadcast %cst_7 : f32 to vector<1x512xf32>
    %15 = arith.divf %13, %14 : vector<1x512xf32>
    %16 = arith.mulf %9, %9 : vector<8x512xf32>
    %cst_8 = arith.constant dense<0.000000e+00> : vector<512xf32>
    %17 = vector.multi_reduction <add>, %16, %cst_8 [0] : vector<8x512xf32> to vector<512xf32>
    %18 = vector.shape_cast %17 : vector<512xf32> to vector<1x512xf32>
    %cst_9 = arith.constant 8.000000e+00 : f32
    %19 = vector.broadcast %cst_9 : f32 to vector<1x512xf32>
    %20 = arith.divf %18, %19 : vector<1x512xf32>
    %21 = arith.mulf %15, %15 : vector<1x512xf32>
    %22 = arith.subf %20, %21 : vector<1x512xf32>
    %cst_10 = arith.constant 0.000000e+00 : f32
    %23 = vector.broadcast %cst_10 : f32 to vector<1x512xf32>
    %24 = arith.maximumf %22, %23 : vector<1x512xf32>
    %cst_11 = arith.constant 9.99999974E-6 : f32
    %25 = vector.broadcast %cst_11 : f32 to vector<1x512xf32>
    %26 = arith.addf %24, %25 : vector<1x512xf32>
    %27 = math.rsqrt %26 : vector<1x512xf32>
    %28 = arith.mulf %10, %27 : vector<1x512xf32>
    %29 = arith.mulf %15, %28 : vector<1x512xf32>
    %30 = arith.subf %11, %29 : vector<1x512xf32>
    %31 = vector.broadcast %28 : vector<1x512xf32> to vector<8x512xf32>
    %32 = arith.mulf %9, %31 : vector<8x512xf32>
    %33 = vector.broadcast %30 : vector<1x512xf32> to vector<8x512xf32>
    %34 = arith.addf %32, %33 : vector<8x512xf32>
    %cst_12 = arith.constant 0.000000e+00 : f32
    %35 = vector.broadcast %cst_12 : f32 to vector<8x512xf32>
    %36 = arith.maximumf %34, %35 : vector<8x512xf32>
    %c0_i32_13 = arith.constant 0 : i32
    %37 = tpu.memref_slice %arg10[%c0_i32_13] : memref<3x!tpu.dma_semaphore, #tpu.memory_space<semaphore_mem>> -> memref<1x!tpu.dma_semaphore, #tpu.memory_space<semaphore_mem>>
    %38 = tpu.memref_squeeze %37 : memref<1x!tpu.dma_semaphore, #tpu.memory_space<semaphore_mem>> -> memref<!tpu.dma_semaphore, #tpu.memory_space<semaphore_mem>>
    tpu.wait_dma2 semaphore(%38 : memref<!tpu.dma_semaphore, #tpu.memory_space<semaphore_mem>>) src(%arg3 : memref<512x512xbf16, #tpu.memory_space<any>>) dst(%arg7 : memref<512x512xbf16, #tpu.memory_space<vmem>>)
    %39 = arith.truncf %36 : vector<8x512xf32> to vector<8x512xbf16>
    %c0_14 = arith.constant 0 : index
    %c0_15 = arith.constant 0 : index
    %40 = vector.load %arg7[%c0_14, %c0_15] : memref<512x512xbf16, #tpu.memory_space<vmem>>, vector<512x512xbf16>
    %cst_16 = arith.constant dense<0.000000e+00> : vector<8x512xf32>
    %41 = tpu.matmul %39, %40, %cst_16 {dimension_numbers = #tpu.dot_dimension_numbers<[1], [0], [0], [1], [0, 0, 1, 1], [], []>} : vector<8x512xbf16>, vector<512x512xbf16>, vector<8x512xf32> -> vector<8x512xf32>
    %c2 = arith.constant 2 : index
    %c0_17 = arith.constant 0 : index
    %42 = vector.load %arg2[%c2, %c0_17] : memref<8x512xf32, #tpu.memory_space<vmem>>, vector<1x512xf32>
    %c3 = arith.constant 3 : index
    %c0_18 = arith.constant 0 : index
    %43 = vector.load %arg2[%c3, %c0_18] : memref<8x512xf32, #tpu.memory_space<vmem>>, vector<1x512xf32>
    %cst_19 = arith.constant dense<0.000000e+00> : vector<512xf32>
    %44 = vector.multi_reduction <add>, %41, %cst_19 [0] : vector<8x512xf32> to vector<512xf32>
    %45 = vector.shape_cast %44 : vector<512xf32> to vector<1x512xf32>
    %cst_20 = arith.constant 8.000000e+00 : f32
    %46 = vector.broadcast %cst_20 : f32 to vector<1x512xf32>
    %47 = arith.divf %45, %46 : vector<1x512xf32>
    %48 = arith.mulf %41, %41 : vector<8x512xf32>
    %cst_21 = arith.constant dense<0.000000e+00> : vector<512xf32>
    %49 = vector.multi_reduction <add>, %48, %cst_21 [0] : vector<8x512xf32> to vector<512xf32>
    %50 = vector.shape_cast %49 : vector<512xf32> to vector<1x512xf32>
    %cst_22 = arith.constant 8.000000e+00 : f32
    %51 = vector.broadcast %cst_22 : f32 to vector<1x512xf32>
    %52 = arith.divf %50, %51 : vector<1x512xf32>
    %53 = arith.mulf %47, %47 : vector<1x512xf32>
    %54 = arith.subf %52, %53 : vector<1x512xf32>
    %cst_23 = arith.constant 0.000000e+00 : f32
    %55 = vector.broadcast %cst_23 : f32 to vector<1x512xf32>
    %56 = arith.maximumf %54, %55 : vector<1x512xf32>
    %cst_24 = arith.constant 9.99999974E-6 : f32
    %57 = vector.broadcast %cst_24 : f32 to vector<1x512xf32>
    %58 = arith.addf %56, %57 : vector<1x512xf32>
    %59 = math.rsqrt %58 : vector<1x512xf32>
    %60 = arith.mulf %42, %59 : vector<1x512xf32>
    %61 = arith.mulf %47, %60 : vector<1x512xf32>
    %62 = arith.subf %43, %61 : vector<1x512xf32>
    %63 = vector.broadcast %60 : vector<1x512xf32> to vector<8x512xf32>
    %64 = arith.mulf %41, %63 : vector<8x512xf32>
    %65 = vector.broadcast %62 : vector<1x512xf32> to vector<8x512xf32>
    %66 = arith.addf %64, %65 : vector<8x512xf32>
    %cst_25 = arith.constant 0.000000e+00 : f32
    %67 = vector.broadcast %cst_25 : f32 to vector<8x512xf32>
    %68 = arith.maximumf %66, %67 : vector<8x512xf32>
    %c1_i32_26 = arith.constant 1 : i32
    %69 = tpu.memref_slice %arg10[%c1_i32_26] : memref<3x!tpu.dma_semaphore, #tpu.memory_space<semaphore_mem>> -> memref<1x!tpu.dma_semaphore, #tpu.memory_space<semaphore_mem>>
    %70 = tpu.memref_squeeze %69 : memref<1x!tpu.dma_semaphore, #tpu.memory_space<semaphore_mem>> -> memref<!tpu.dma_semaphore, #tpu.memory_space<semaphore_mem>>
    tpu.wait_dma2 semaphore(%70 : memref<!tpu.dma_semaphore, #tpu.memory_space<semaphore_mem>>) src(%arg4 : memref<512x256xbf16, #tpu.memory_space<any>>) dst(%arg8 : memref<512x256xbf16, #tpu.memory_space<vmem>>)
    %71 = arith.truncf %68 : vector<8x512xf32> to vector<8x512xbf16>
    %c0_27 = arith.constant 0 : index
    %c0_28 = arith.constant 0 : index
    %72 = vector.load %arg8[%c0_27, %c0_28] : memref<512x256xbf16, #tpu.memory_space<vmem>>, vector<512x256xbf16>
    %cst_29 = arith.constant dense<0.000000e+00> : vector<8x256xf32>
    %73 = tpu.matmul %71, %72, %cst_29 {dimension_numbers = #tpu.dot_dimension_numbers<[1], [0], [0], [1], [0, 0, 1, 1], [], []>} : vector<8x512xbf16>, vector<512x256xbf16>, vector<8x256xf32> -> vector<8x256xf32>
    %c4 = arith.constant 4 : index
    %c0_30 = arith.constant 0 : index
    %74 = vector.load %arg2[%c4, %c0_30] : memref<8x512xf32, #tpu.memory_space<vmem>>, vector<1x256xf32>
    %c5 = arith.constant 5 : index
    %c0_31 = arith.constant 0 : index
    %75 = vector.load %arg2[%c5, %c0_31] : memref<8x512xf32, #tpu.memory_space<vmem>>, vector<1x256xf32>
    %cst_32 = arith.constant dense<0.000000e+00> : vector<256xf32>
    %76 = vector.multi_reduction <add>, %73, %cst_32 [0] : vector<8x256xf32> to vector<256xf32>
    %77 = vector.shape_cast %76 : vector<256xf32> to vector<1x256xf32>
    %cst_33 = arith.constant 8.000000e+00 : f32
    %78 = vector.broadcast %cst_33 : f32 to vector<1x256xf32>
    %79 = arith.divf %77, %78 : vector<1x256xf32>
    %80 = arith.mulf %73, %73 : vector<8x256xf32>
    %cst_34 = arith.constant dense<0.000000e+00> : vector<256xf32>
    %81 = vector.multi_reduction <add>, %80, %cst_34 [0] : vector<8x256xf32> to vector<256xf32>
    %82 = vector.shape_cast %81 : vector<256xf32> to vector<1x256xf32>
    %cst_35 = arith.constant 8.000000e+00 : f32
    %83 = vector.broadcast %cst_35 : f32 to vector<1x256xf32>
    %84 = arith.divf %82, %83 : vector<1x256xf32>
    %85 = arith.mulf %79, %79 : vector<1x256xf32>
    %86 = arith.subf %84, %85 : vector<1x256xf32>
    %cst_36 = arith.constant 0.000000e+00 : f32
    %87 = vector.broadcast %cst_36 : f32 to vector<1x256xf32>
    %88 = arith.maximumf %86, %87 : vector<1x256xf32>
    %cst_37 = arith.constant 9.99999974E-6 : f32
    %89 = vector.broadcast %cst_37 : f32 to vector<1x256xf32>
    %90 = arith.addf %88, %89 : vector<1x256xf32>
    %91 = math.rsqrt %90 : vector<1x256xf32>
    %92 = arith.mulf %74, %91 : vector<1x256xf32>
    %93 = arith.mulf %79, %92 : vector<1x256xf32>
    %94 = arith.subf %75, %93 : vector<1x256xf32>
    %95 = vector.broadcast %92 : vector<1x256xf32> to vector<8x256xf32>
    %96 = arith.mulf %73, %95 : vector<8x256xf32>
    %97 = vector.broadcast %94 : vector<1x256xf32> to vector<8x256xf32>
    %98 = arith.addf %96, %97 : vector<8x256xf32>
    %cst_38 = arith.constant 0.000000e+00 : f32
    %99 = vector.broadcast %cst_38 : f32 to vector<8x256xf32>
    %100 = arith.maximumf %98, %99 : vector<8x256xf32>
    %c2_i32_39 = arith.constant 2 : i32
    %101 = tpu.memref_slice %arg10[%c2_i32_39] : memref<3x!tpu.dma_semaphore, #tpu.memory_space<semaphore_mem>> -> memref<1x!tpu.dma_semaphore, #tpu.memory_space<semaphore_mem>>
    %102 = tpu.memref_squeeze %101 : memref<1x!tpu.dma_semaphore, #tpu.memory_space<semaphore_mem>> -> memref<!tpu.dma_semaphore, #tpu.memory_space<semaphore_mem>>
    tpu.wait_dma2 semaphore(%102 : memref<!tpu.dma_semaphore, #tpu.memory_space<semaphore_mem>>) src(%arg5 : memref<256x128xbf16, #tpu.memory_space<any>>) dst(%arg9 : memref<256x128xbf16, #tpu.memory_space<vmem>>)
    %103 = arith.truncf %100 : vector<8x256xf32> to vector<8x256xbf16>
    %c0_40 = arith.constant 0 : index
    %c0_41 = arith.constant 0 : index
    %104 = vector.load %arg9[%c0_40, %c0_41] : memref<256x128xbf16, #tpu.memory_space<vmem>>, vector<256x128xbf16>
    %cst_42 = arith.constant dense<0.000000e+00> : vector<8x128xf32>
    %105 = tpu.matmul %103, %104, %cst_42 {dimension_numbers = #tpu.dot_dimension_numbers<[1], [0], [0], [1], [0, 0, 1, 1], [], []>} : vector<8x256xbf16>, vector<256x128xbf16>, vector<8x128xf32> -> vector<8x128xf32>
    %c6 = arith.constant 6 : index
    %c0_43 = arith.constant 0 : index
    %106 = vector.load %arg2[%c6, %c0_43] : memref<8x512xf32, #tpu.memory_space<vmem>>, vector<1x128xf32>
    %107 = vector.broadcast %106 : vector<1x128xf32> to vector<8x128xf32>
    %108 = arith.addf %105, %107 : vector<8x128xf32>
    %c0_44 = arith.constant 0 : index
    %c0_45 = arith.constant 0 : index
    %109 = vector.load %arg6[%c0_44, %c0_45] : memref<8x128xf32, #tpu.memory_space<vmem>>, vector<8x128xf32>
    tpu.vector_store %arg6[%c0_44, %c0_45], %108 {strides = array<i32>} : memref<8x128xf32, #tpu.memory_space<vmem>>, vector<8x128xf32>,
    return
  }
}

</mosaic_0001>

<bundles_post_ra>
// kernel: dqn_forward.1
= control target key start
LH: loop header
LB: loop body
LE: loop exit
PB: predicated region body
PF: predicated region fallthrough
CT: control target
= control target key end

     0   :  { %11 = vsyncpa [#allocation7], 0  ;;  %s1853_s0 = inlined_call_operand.hbm [shape: f32[8,32], index: 0, kind: input, shape index: {}]   ;;  %s1854_s1 = inlined_call_operand.hbm [shape: bf16[32,512], index: 1, kind: input, shape index: {}]   ;;  %s1855_s2 = inlined_call_operand.hbm [shape: f32[8,512], index: 2, kind: input, shape index: {}]   ;;  %s1856_s3 = inlined_call_operand.hbm [shape: bf16[512,512], index: 3, kind: input, shape index: {}]   ;;  %s1857_s4 = inlined_call_operand.hbm [shape: bf16[512,256], index: 4, kind: input, shape index: {}]   ;;  %s1858_s5 = inlined_call_operand.hbm [shape: bf16[256,128], index: 5, kind: input, shape index: {}]   ;;  %s1859_s6 = inlined_call_operand.hbm [shape: f32[8,128], index: 6, kind: output, shape index: {}]  }
   0x1   :  { %12 = vsyncpa [#allocation10], 0 }
   0x2   :  { %13 = vsyncpa [#allocation8], 0  ;;  %s1566_s21 = smov [#allocation9]   ;;  %s1444_s25 = scalar_lea.hbm %s1854_s1, 1024 }
   0x3   :  { %s29_s22 = sshll.u32 %s1566_s21, 4  ;;  %p1445_p0 = scmp.ne.s32.totalorder %s1854_s1, %s1444_s25  ;;  %s30_s22 = int_to_ptr.vmem [resolvable:$true] %s29_s22 }
   0x4   :  { %p1448_p1 = scmp.lt.u32.totalorder %s1444_s25, %s1854_s1 }
   0x6   :  { %p1450_p2 = pnand %p1448_p1, %p1445_p0 }
   0x8   :  { %1453 = shalt.err (!%p1450_p2)
}
   0x9   :  { %s1454_s30 = scalar_lea.vmem %s30_s22, 1024  ;;  %p1459_p4 = scmp.lt.s32.totalorder %s30_s22, %s30_s22 }
   0xa   :  { %p1455_p3 = scmp.ne.s32.totalorder %s30_s22, %s1454_s30  ;;  %p1460_p5 = scmp.lt.s32.totalorder %s1454_s30, %s1454_s30 }
   0xc   :  { %p1461_p6 = por %p1460_p5, %p1459_p4 }
   0xe   :  { %p1462_p7 = pnand %p1461_p6, %p1455_p3 }
  0x10   :  { %1465 = shalt.err (!%p1462_p7)
}
  0x11   :  { %s1567_s7 = smov 256   ;;  %s1568_s8 = smov 16  }
  0x12   :  { %35 = dma.hbm_to_vmem [thread:$0]  %s1854_s1, 1024, %s30_s22, [#allocation10], %s1567_s7, %s1567_s7, %s1568_s8  }
  0x13   :  { %s1569_s11 = smov [#allocation6]   ;;  %s1570_s13 = smov [#allocation11]  }
  0x14   :  { %s20_s12 = sshll.u32 %s1569_s11, 4  ;;  %s42_s14 = sshll.u32 %s1570_s13, 4  ;;  %s21_s12 = int_to_ptr.vmem [resolvable:$true] %s20_s12  ;;  %s43_s14 = int_to_ptr.vmem [resolvable:$true] %s42_s14 }
  0x15   :  { %s1466_s17 = scalar_lea.hbm %s1853_s0, 128 }
  0x16   :  { %p1467_p8 = scmp.ne.s32.totalorder %s1853_s0, %s1466_s17  ;;  %p1470_p9 = scmp.lt.u32.totalorder %s1466_s17, %s1853_s0 }
  0x18   :  { %p1472_p10 = pnand %p1470_p9, %p1467_p8 }
  0x1a   :  { %1475 = shalt.err (!%p1472_p10)
}
  0x1b   :  { %s1476_s1 = scalar_lea.vmem %s21_s12, 128  ;;  %p1481_p12 = scmp.lt.s32.totalorder %s21_s12, %s21_s12 }
  0x1c   :  { %p1477_p11 = scmp.ne.s32.totalorder %s21_s12, %s1476_s1  ;;  %p1482_p13 = scmp.lt.s32.totalorder %s1476_s1, %s1476_s1 }
  0x1e   :  { %p1483_p0 = por %p1482_p13, %p1481_p12 }
  0x20   :  { %p1484_p1 = pnand %p1483_p0, %p1477_p11 }
  0x22   :  { %1487 = shalt.err (!%p1484_p1)
}
  0x23   :  { %23 = dma.hbm_to_vmem [thread:$0]  %s1853_s0, 128, %s21_s12, [#allocation7]  }
  0x24   :  { %s1488_s26 = scalar_lea.hbm %s1855_s2, 512 }
  0x25   :  { %p1489_p2 = scmp.ne.s32.totalorder %s1855_s2, %s1488_s26  ;;  %p1492_p3 = scmp.lt.u32.totalorder %s1488_s26, %s1855_s2 }
  0x27   :  { %p1494_p4 = pnand %p1492_p3, %p1489_p2 }
  0x29   :  { %1497 = shalt.err (!%p1494_p4)
}
  0x2a   :  { %s1498_s8 = scalar_lea.vmem %s43_s14, 512  ;;  %p1503_p6 = scmp.lt.s32.totalorder %s43_s14, %s43_s14 }
  0x2b   :  { %p1499_p5 = scmp.ne.s32.totalorder %s43_s14, %s1498_s8  ;;  %p1504_p7 = scmp.lt.s32.totalorder %s1498_s8, %s1498_s8 }
  0x2d   :  { %p1505_p8 = por %p1504_p7, %p1503_p6 }
  0x2f   :  { %p1506_p9 = pnand %p1505_p8, %p1499_p5 }
  0x31   :  { %1509 = shalt.err (!%p1506_p9)
}
  0x32   :  { %45 = dma.hbm_to_vmem [thread:$0]  %s1855_s2, 512, %s43_s14, [#allocation10]  }
  0x33   :  { %1554 = dma.done.wait [#allocation7], 128  }
  0x34   :  { %1555 = vsyncadd [#allocation7], 4294967168 }
  0x35   :  { %1556 = dma.done.wait [#allocation10], 1536  }
  0x36   :  { %1557 = vsyncadd [#allocation10], 4294965760  ;;  %s60_s10 = sld [smem:[#allocation0]]   ;;  %s1571_s11 = smov 512   ;;  %v1572_v0 = vmov 0   ;;  %vm188_vm0 = vcmask 261120  }
  0x37   :  { %72 = sst [smem:[#allocation14]] %s1571_s11  ;;  %224 = vmatprep.mubr.bf16.mxu0 %v1572_v0  ;;  %s1573_s12 = smov [#allocation2]  }
  0x38   :  { %74 = sst [smem:[#allocation14 + $0x1]] %s1571_s11  ;;  %s68_s13 = sshll.u32 %s1573_s12, 4  ;;  %s69_s13 = int_to_ptr.vmem [resolvable:$true] %s68_s13 }
  0x39   :  { %84 = sst [smem:[#allocation14 + $0x6]] %s1567_s7  ;;  %s1574_s15 = smov 4  }
  0x3a   :  { %76 = sst [smem:[#allocation14 + $0x2]] %s1574_s15  ;;  %s1575_s16 = smov 64  }
  0x3b   :  { %78 = sst [smem:[#allocation14 + $0x3]] %s1575_s16  ;;  %s1576_s14 = smov 128  }
  0x3c   :  { %s1343_s2 = sshll.u32 %s60_s10, 26  ;;  %80 = sst [smem:[#allocation14 + $0x4]] %s1576_s14 }
  0x3d   :  { %s1344_s17 = sadd.s32 134217728, %s1343_s2  ;;  %s1577_s18 = smov 2  }
  0x3e   :  { %82 = sst [smem:[#allocation14 + $0x5]] %s1577_s18  ;;  %s1578_s19 = smov [#allocation5]  }
  0x3f   :  { %86 = sst [smem:[#allocation14 + $0x7]] %s1575_s16  ;;  %s1579_s20 = smov [#allocation13]  }
  0x40   :  { %88 = sst [smem:[#allocation14 + $0x8]] %s1574_s15  ;;  %s1580_s22 = smov [#allocation3]  }
  0x41   :  { %90 = dma.general %s1856_s3, 16384, %s69_s13, %s1578_s19, %s1579_s20, [#allocation14], %s1344_s17, 0  }
  0x42   :  { %107 = sst [smem:[#allocation16]] %s1567_s7  ;;  %s103_s23 = sshll.u32 %s1580_s22, 4  ;;  %s104_s23 = int_to_ptr.vmem [resolvable:$true] %s103_s23 }
  0x43   :  { %109 = sst [smem:[#allocation16 + $0x1]] %s1567_s7  ;;  %s1581_s24 = smov [#allocation5 + $0x1]  }
  0x44   :  { %111 = sst [smem:[#allocation16 + $0x2]] %s1577_s18  ;;  %s1582_s25 = smov [#allocation15]  }
  0x45   :  { %113 = sst [smem:[#allocation16 + $0x3]] %s1575_s16  ;;  %s1583_s3 = smov [#allocation4]  }
  0x46   :  { %115 = sst [smem:[#allocation16 + $0x4]] %s1576_s14  ;;  %s1510_s29 = scalar_lea.hbm %s1858_s5, 2048 }
  0x47   :  { %117 = sst [smem:[#allocation16 + $0x5]] %s1577_s18  ;;  %p1511_p10 = scmp.ne.s32.totalorder %s1858_s5, %s1510_s29 }
  0x48   :  { %119 = sst [smem:[#allocation16 + $0x6]] %s1576_s14  ;;  %p1514_p11 = scmp.lt.u32.totalorder %s1510_s29, %s1858_s5 }
  0x49   :  { %121 = sst [smem:[#allocation16 + $0x7]] %s1575_s16 }
  0x4a   :  { %123 = sst [smem:[#allocation16 + $0x8]] %s1574_s15  ;;  %p1516_p12 = pnand %p1514_p11, %p1511_p10 }
  0x4b   :  { %125 = dma.general %s1857_s4, 8192, %s104_s23, %s1581_s24, %s1582_s25, [#allocation16], %s1344_s17, 0  }
  0x4c   :  { %v1412_v1 = vld [vmem:[#allocation9 + $0x4] ss:$16 sps:$4 sm:$0xff]   ;;  %v1414_v2 = vld [vmem:[#allocation9] ss:$16 sps:$4 sm:$0xff]   ;;  %v138_v5 = vld [vmem:[#allocation6] sm:$0xff]  ;;  %s134_s4 = sshll.u32 %s1583_s3, 4  ;;  %s135_s4 = int_to_ptr.vmem [resolvable:$true] %s134_s4 }
  0x4d   :  { %192 = vmatprep.subr.bf16.mxu0 %v1412_v1  ;;  %v1415_v3 = vld [vmem:[#allocation9 + $0x24] ss:$16 sps:$4 sm:$0xff]   ;;  %v1417_v4 = vld [vmem:[#allocation9 + $0x20] ss:$16 sps:$4 sm:$0xff]   ;;  %v1420_v6 = vld [vmem:[#allocation9 + $0xc] ss:$16 sps:$4 sm:$0xff]   ;;  %v139_v7 = vpack.c.bf16 %v138_v5, %v138_v5 }
  0x4e   :  { %193 = vmatpush1.bf16.msra.mxu0 %v1414_v2  ;;  %v1418_v8 = vld [vmem:[#allocation9 + $0x8] ss:$16 sps:$4 sm:$0xff]   ;;  %v1423_v9 = vld [vmem:[#allocation9 + $0x2c] ss:$16 sps:$4 sm:$0xff]  }
  0x4f   :  { %194 = vmatprep.subr.bf16.mxu0 %v1415_v3  ;;  %v1421_v10 = vld [vmem:[#allocation9 + $0x28] ss:$16 sps:$4 sm:$0xff]  }
  0x52   :  { %195 = vmatpush1.bf16.msra.mxu0 %v1417_v4 }
  0x53   :  { %233 = vmatprep.subr.bf16.mxu0 %v1420_v6 }
  0x55   :  { %1355 = vmatmul.mubr.msk.bf16.vlgmr.msra.gmra.mrb[0].mxu0 %vm188_vm0, %v139_v7 }
  0x56   :  { %234 = vmatpush1.bf16.msra.mxu0 %v1418_v8  ;;  %265 = vmatprep.mubr.bf16.mxu0 %v1572_v0 }
  0x57   :  { %235 = vmatprep.subr.bf16.mxu0 %v1423_v9 }
  0x5a   :  { %236 = vmatpush1.bf16.msra.mxu0 %v1421_v10 }
  0x5d   :  { %1356 = vmatmul.mubr.msk.bf16.vlgmr.msra.gmra.mrb[4].mxu0 %vm188_vm0, %v139_v7 }
  0x5e   :  { %1519 = shalt.err (!%p1516_p12)  }
  0x5f   :  { %s1520_s10 = scalar_lea.vmem %s135_s4, 2048  ;;  %p1525_p0 = scmp.lt.s32.totalorder %s135_s4, %s135_s4 }
  0x60   :  { %p1521_p13 = scmp.ne.s32.totalorder %s135_s4, %s1520_s10  ;;  %p1526_p1 = scmp.lt.s32.totalorder %s1520_s10, %s1520_s10 }
  0x62   :  { %p1527_p2 = por %p1526_p1, %p1525_p0 }
  0x64   :  { %p1528_p3 = pnand %p1527_p2, %p1521_p13 }
  0x66   :  { %1531 = shalt.err (!%p1528_p3)  }
  0x67   :  { %137 = dma.hbm_to_vmem [thread:$0]  %s1858_s5, 2048, %s135_s4, [#allocation5 + $0x2] }
 0x128   :  { %v1680_v11 = vpop.f32.mrb[0].mxu0 }
 0x129   :  { %v277_v12 = vrot.slane %v1680_v11, 4  ;;  %v306_v13 = vmul.f32 %v1680_v11, %v1680_v11  ;;  %v1685_v14 = vpop.f32.mrb[1].mxu0 }
 0x12a   :  { %v283_v15 = vrot.slane %v1685_v14, 4  ;;  %v307_v16 = vmul.f32 %v1685_v14, %v1685_v14  ;;  %v230_v17 = vpop.f32.mrb[2].mxu0 }
 0x12b   :  { %v278_v18 = vadd.f32 %v277_v12, %v1680_v11  ;;  %v310_v19 = vrot.slane %v306_v13, 4  ;;  %v231_v20 = vpop.f32.mrb[3].mxu0 }
 0x12c   :  { %v284_v21 = vadd.f32 %v283_v15, %v1685_v14  ;;  %v316_v22 = vrot.slane %v307_v16, 4 }
 0x12d   :  { %v279_v23 = vrot.slane %v278_v18, 2  ;;  %v311_v24 = vadd.f32 %v310_v19, %v306_v13 }
 0x12e   :  { %v285_v25 = vrot.slane %v284_v21, 2  ;;  %v317_v26 = vadd.f32 %v316_v22, %v307_v16 }
 0x12f   :  { %v280_v27 = vadd.f32 %v279_v23, %v278_v18  ;;  %v312_v28 = vrot.slane %v311_v24, 2 }
 0x130   :  { %v286_v29 = vadd.f32 %v285_v25, %v284_v21  ;;  %v318_v30 = vrot.slane %v317_v26, 2  ;;  %v1692_v31 = vpop.f32.mrb[4].mxu0 }
 0x131   :  { %v281_v32 = vrot.slane %v280_v27, 1  ;;  %v313_v33 = vadd.f32 %v312_v28, %v311_v24  ;;  %v289_v34 = vrot.slane %v1692_v31, 4  ;;  %v308_v35 = vmul.f32 %v1692_v31, %v1692_v31  ;;  %v1697_v36 = vpop.f32.mrb[5].mxu0 }
 0x132   :  { %v287_v37 = vrot.slane %v286_v29, 1  ;;  %v319_v38 = vadd.f32 %v318_v30, %v317_v26  ;;  %v295_v39 = vrot.slane %v1697_v36, 4  ;;  %v309_v40 = vmul.f32 %v1697_v36, %v1697_v36  ;;  %v271_v41 = vpop.f32.mrb[6].mxu0 }
 0x133   :  { %v282_v42 = vadd.f32 %v281_v32, %v280_v27  ;;  %v314_v43 = vrot.slane %v313_v33, 1  ;;  %v290_v44 = vadd.f32 %v289_v34, %v1692_v31  ;;  %v322_v45 = vrot.slane %v308_v35, 4  ;;  %v272_v46 = vpop.f32.mrb[7].mxu0 }
 0x134   :  { %v288_v47 = vadd.f32 %v287_v37, %v286_v29  ;;  %v320_v48 = vrot.slane %v319_v38, 1  ;;  %v296_v49 = vadd.f32 %v295_v39, %v1697_v36  ;;  %v328_v50 = vrot.slane %v309_v40, 4 }
 0x135   :  { %v1704_v51 = vmul.f32 0.125, %v282_v42  ;;  %v315_v52 = vadd.f32 %v314_v43, %v313_v33  ;;  %v291_v53 = vrot.slane %v290_v44, 2  ;;  %v323_v54 = vadd.f32 %v322_v45, %v308_v35 }
 0x136   :  { %v1706_v55 = vmul.f32 0.125, %v288_v47  ;;  %v321_v56 = vadd.f32 %v320_v48, %v319_v38  ;;  %v297_v57 = vrot.slane %v296_v49, 2  ;;  %v329_v58 = vadd.f32 %v328_v50, %v309_v40  ;;  %v274_v50 = vld [vmem:[#allocation11] ss:$8 sm:$0xf] }
 0x137   :  { %v334_v59 = vmul.f32 0.125, %v315_v52  ;;  %v338_v60 = vmul.f32 %v1704_v51, %v1704_v51  ;;  %v292_v61 = vadd.f32 %v291_v53, %v290_v44  ;;  %v324_v62 = vrot.slane %v323_v54, 2 }
 0x138   :  { %v335_v63 = vmul.f32 0.125, %v321_v56  ;;  %v339_v0 = vmul.f32 %v1706_v55, %v1706_v55  ;;  %v298_v1 = vadd.f32 %v297_v57, %v296_v49  ;;  %v330_v2 = vrot.slane %v329_v58, 2 }
 0x139   :  { %v342_v3 = vsub.f32 %v334_v59, %v338_v60  ;;  %v293_v4 = vrot.slane %v292_v61, 1  ;;  %v325_v5 = vadd.f32 %v324_v62, %v323_v54  ;;  %v1584_v35 = vmov 1966171168  }
 0x13a   :  { %v343_v6 = vsub.f32 %v335_v63, %v339_v0  ;;  %v299_v7 = vrot.slane %v298_v1, 1  ;;  %v331_v8 = vadd.f32 %v330_v2, %v329_v58  ;;  %v365_v37 = vunpack.c.l.s4 %v1584_v35 }
 0x13b   :  { %v346_v9 = vmax.f32 %v342_v3, 0.0  ;;  %v294_v10 = vadd.f32 %v293_v4, %v292_v61  ;;  %v326_v12 = vrot.slane %v325_v5, 1  ;;  %v367_v38 = vlaneseq }
 0x13c   :  { %v347_v13 = vmax.f32 %v343_v6, 0.0  ;;  %v300_v15 = vadd.f32 %v299_v7, %v298_v1  ;;  %v332_v16 = vrot.slane %v331_v8, 1  ;;  %v366_v41 = vunpack.c.0.s8 %v365_v37 }
 0x13d   :  { %v350_v17 = vadd.f32 1e-05, %v346_v9  ;;  %v304_v18 = vmul.f32 0.125, %v294_v10  ;;  %v327_v19 = vadd.f32 %v326_v12, %v325_v5  ;;  %v368_v42 = vshrl.u32 %v367_v38, 7 }
 0x13e   :  { %v351_v20 = vadd.f32 1e-05, %v347_v13  ;;  %v305_v21 = vmul.f32 0.125, %v300_v15  ;;  %v333_v22 = vadd.f32 %v332_v16, %v331_v8 }
 0x13f   :  { %1424 = vrsqrt.f32 %v350_v17  ;;  %v336_v23 = vmul.f32 0.125, %v327_v19  ;;  %v340_v24 = vmul.f32 %v304_v18, %v304_v18  ;;  %v1712_v44 = vsub.s32 %v366_v41, %v368_v42 }
 0x140   :  { %1426 = vrsqrt.f32 %v351_v20  ;;  %v337_v25 = vmul.f32 0.125, %v333_v22  ;;  %v341_v26 = vmul.f32 %v305_v21, %v305_v21  ;;  %v1716_v52 = vsub.s32 0, %v368_v42 }
 0x141   :  { %v344_v27 = vsub.f32 %v336_v23, %v340_v24  ;;  %v1719_v54 = vsub.s32 1, %v368_v42  ;;  %v1721_v56 = vsub.s32 2, %v368_v42  ;;  %v1723_v57 = vsub.s32 3, %v368_v42 }
 0x142   :  { %v345_v28 = vsub.f32 %v337_v25, %v341_v26 }
 0x143   :  { %v348_v29 = vmax.f32 %v344_v27, 0.0 }
 0x144   :  { %v349_v30 = vmax.f32 %v345_v28, 0.0 }
 0x145   :  { %v352_v32 = vadd.f32 1e-05, %v348_v29 }
 0x146   :  { %v353_v33 = vadd.f32 1e-05, %v349_v30 }
 0x147   :  { %1428 = vrsqrt.f32 %v352_v32 }
 0x148   :  { %1430 = vrsqrt.f32 %v353_v33 }
 0x149   :  { %v1425_v34 = vpop.eup %1424 }
 0x14a   :  { %v1427_v39 = vpop.eup %1426 }
 0x14b   :  { %v362_v40 = vcombine.low %v1425_v34, %v1427_v39 }
 0x14d   :  { %v370_v47 = vrot.slane %v362_v40, %v1712_v44 }
 0x151   :  { %v1429_v43 = vpop.eup %1428 }
 0x152   :  { %v1431_v45 = vpop.eup %1430 }
 0x153   :  { %v363_v46 = vcombine.low %v1429_v43, %v1431_v45 }
 0x155   :  { %v377_v48 = vrot.slane %v363_v46, %v1712_v44 }
 0x157   :  { %v378_v49 = vcombine.low %v370_v47, %v377_v48 }
 0x159   :  { %v385_v53 = vrot.slane %v378_v49, %v1712_v44 }
 0x15b   :  { %v387_v58 = vmul.f32 %v385_v53, %v274_v50 }
 0x15d   :  { %v392_v59 = vrot.slane %v387_v58, %v1716_v52  ;;  %v396_v60 = vrot.slane %v387_v58, %v1719_v54  ;;  %v400_v61 = vrot.slane %v387_v58, %v1721_v56  ;;  %v404_v62 = vrot.slane %v387_v58, %v1723_v57 }
 0x15f   :  { %v409_v63 = vmul.f32 %v392_v59, %v1704_v51  ;;  %v410_v0 = vmul.f32 %v396_v60, %v1706_v55  ;;  %v411_v1 = vmul.f32 %v400_v61, %v304_v18  ;;  %v412_v2 = vmul.f32 %v404_v62, %v305_v21  ;;  %v276_v51 = vld [vmem:[#allocation11 + $0x1] ss:$8 sm:$0xf] }
 0x160   :  { %v443_v3 = vmul.f32 %v392_v59, %v1680_v11  ;;  %v444_v4 = vmul.f32 %v396_v60, %v1685_v14  ;;  %v445_v5 = vmul.f32 %v400_v61, %v1692_v31  ;;  %v446_v6 = vmul.f32 %v404_v62, %v1697_v36 }
 0x161   :  { %v417_v7 = vcombine.low %v409_v63, %v410_v0  ;;  %v418_v8 = vcombine.low %v411_v1, %v412_v2 }
 0x163   :  { %v425_v9 = vrot.slane %v417_v7, %v1712_v44  ;;  %v432_v10 = vrot.slane %v418_v8, %v1712_v44 }
 0x165   :  { %v433_v12 = vcombine.low %v425_v9, %v432_v10 }
 0x167   :  { %v440_v55 = vrot.slane %v433_v12, %v1712_v44 }
 0x169   :  { %v442_v13 = vsub.f32 %v276_v51, %v440_v55 }
 0x16b   :  { %v451_v15 = vrot.slane %v442_v13, %v1716_v52  ;;  %v455_v11 = vrot.slane %v442_v13, %v1719_v54  ;;  %v459_v14 = vrot.slane %v442_v13, %v1721_v56  ;;  %v463_v31 = vrot.slane %v442_v13, %v1723_v57 }
 0x16d   :  { %v1742_v36 = vadd.f32 %v451_v15, %v443_v3  ;;  %v469_v16 = vadd.f32 %v455_v11, %v444_v4  ;;  %v1744_v17 = vadd.f32 %v459_v14, %v445_v5  ;;  %v471_v18 = vadd.f32 %v463_v31, %v446_v6 }
 0x16f   :  { %v472_v19 = vmax.f32 %v1742_v36, 0.0  ;;  %v473_v20 = vmax.f32 %v469_v16, 0.0  ;;  %v474_v21 = vmax.f32 %v1744_v17, 0.0  ;;  %v475_v22 = vmax.f32 %v471_v18, 0.0 }
 0x170   :  { %1558 = dma.done.wait [#allocation5], 16384 }
 0x171   :  { %1559 = vsyncadd [#allocation5], 4294950912  ;;  %v1748_v23 = vpack.c.bf16 %v473_v20, %v473_v20  ;;  %v1750_v24 = vpack.c.bf16 %v475_v22, %v475_v22  ;;  %v485_v25 = vld [vmem:[#allocation2 + $0x8] sm:$0xff]  ;;  %v484_v27 = vld [vmem:[#allocation2] sm:$0xff] }
 0x172   :  { %v549_v26 = vld [vmem:[#allocation2 + $0x208] sm:$0xff]  ;;  %612 = vmatprep.subr.bf16.mxu1 %v485_v25  ;;  %v548_v28 = vld [vmem:[#allocation2 + $0x200] sm:$0xff]  ;;  %v490_v36 = vld [vmem:[#allocation2 + $0x30] sm:$0xff] }
 0x173   :  { %644 = vmatprep.mubr.bf16.mxu1 %v1748_v23  ;;  %685 = vmatprep.mubr.bf16.mxu0 %v1750_v24  ;;  %v489_v29 = vld [vmem:[#allocation2 + $0x28] sm:$0xff]  ;;  %v488_v32 = vld [vmem:[#allocation2 + $0x20] sm:$0xff]  ;;  %v494_v17 = vld [vmem:[#allocation2 + $0x50] sm:$0xff] }
 0x174   :  { %653 = vmatprep.subr.bf16.mxu0 %v549_v26  ;;  %v553_v30 = vld [vmem:[#allocation2 + $0x228] sm:$0xff]  ;;  %613 = vmatpush1.bf16.msra.mxu1 %v484_v27  ;;  %v552_v33 = vld [vmem:[#allocation2 + $0x220] sm:$0xff] }
 0x175   :  { %654 = vmatpush1.bf16.msra.mxu0 %v548_v28  ;;  %614 = vmatprep.subr.bf16.mxu1 %v489_v29  ;;  %v493_v34 = vld [vmem:[#allocation2 + $0x48] sm:$0xff]  ;;  %v492_v37 = vld [vmem:[#allocation2 + $0x40] sm:$0xff] }
 0x176   :  { %655 = vmatprep.subr.bf16.mxu0 %v553_v30  ;;  %v557_v35 = vld [vmem:[#allocation2 + $0x248] sm:$0xff]  ;;  %v556_v38 = vld [vmem:[#allocation2 + $0x240] sm:$0xff] }
 0x177   :  { %v497_v39 = vld [vmem:[#allocation2 + $0x68] sm:$0xff]  ;;  %v496_v41 = vld [vmem:[#allocation2 + $0x60] sm:$0xff] }
 0x178   :  { %615 = vmatpush1.bf16.msra.mxu1 %v488_v32  ;;  %v561_v40 = vld [vmem:[#allocation2 + $0x268] sm:$0xff]  ;;  %v560_v42 = vld [vmem:[#allocation2 + $0x260] sm:$0xff] }
 0x179   :  { %656 = vmatpush1.bf16.msra.mxu0 %v552_v33  ;;  %616 = vmatprep.subr.bf16.mxu1 %v493_v34  ;;  %v501_v43 = vld [vmem:[#allocation2 + $0x88] sm:$0xff]  ;;  %v500_v46 = vld [vmem:[#allocation2 + $0x80] sm:$0xff] }
 0x17a   :  { %657 = vmatprep.subr.bf16.mxu0 %v557_v35  ;;  %v565_v45 = vld [vmem:[#allocation2 + $0x288] sm:$0xff]  ;;  %v564_v47 = vld [vmem:[#allocation2 + $0x280] sm:$0xff] }
 0x17b   :  { %v505_v48 = vld [vmem:[#allocation2 + $0xa8] sm:$0xff]  ;;  %v504_v50 = vld [vmem:[#allocation2 + $0xa0] sm:$0xff] }
 0x17c   :  { %617 = vmatpush1.bf16.msra.mxu1 %v492_v37  ;;  %v569_v49 = vld [vmem:[#allocation2 + $0x2a8] sm:$0xff]  ;;  %v568_v53 = vld [vmem:[#allocation2 + $0x2a0] sm:$0xff] }
 0x17d   :  { %658 = vmatpush1.bf16.msra.mxu0 %v556_v38  ;;  %618 = vmatprep.subr.bf16.mxu1 %v497_v39  ;;  %v509_v58 = vld [vmem:[#allocation2 + $0xc8] sm:$0xff]  ;;  %v508_v60 = vld [vmem:[#allocation2 + $0xc0] sm:$0xff]  ;;  %v487_v38 = vld [vmem:[#allocation2 + $0x18] sm:$0xff]  ;;  %v1757_v39 = vpack.c.bf16 %v472_v19, %v472_v19 }
 0x17e   :  { %659 = vmatprep.subr.bf16.mxu0 %v561_v40  ;;  %v573_v59 = vld [vmem:[#allocation2 + $0x2c8] sm:$0xff]  ;;  %v572_v61 = vld [vmem:[#allocation2 + $0x2c0] sm:$0xff]  ;;  %v1762_v40 = vpack.c.bf16 %v474_v21, %v474_v21  ;;  %v495_v19 = vld [vmem:[#allocation2 + $0x58] sm:$0xff] }
 0x17f   :  { %v513_v62 = vld [vmem:[#allocation2 + $0xe8] sm:$0xff]  ;;  %v512_v0 = vld [vmem:[#allocation2 + $0xe0] sm:$0xff]  ;;  %v499_v21 = vld [vmem:[#allocation2 + $0x78] sm:$0xff] }
 0x180   :  { %619 = vmatpush1.bf16.msra.mxu1 %v496_v41  ;;  %v577_v63 = vld [vmem:[#allocation2 + $0x2e8] sm:$0xff]  ;;  %v576_v1 = vld [vmem:[#allocation2 + $0x2e0] sm:$0xff]  ;;  %v486_v41 = vld [vmem:[#allocation2 + $0x10] sm:$0xff] }
 0x181   :  { %660 = vmatpush1.bf16.msra.mxu0 %v560_v42  ;;  %620 = vmatprep.subr.bf16.mxu1 %v501_v43  ;;  %v517_v2 = vld [vmem:[#allocation2 + $0x108] sm:$0xff]  ;;  %v516_v4 = vld [vmem:[#allocation2 + $0x100] sm:$0xff]  ;;  %v491_v42 = vld [vmem:[#allocation2 + $0x38] sm:$0xff] }
 0x182   :  { %661 = vmatprep.subr.bf16.mxu0 %v565_v45  ;;  %v581_v3 = vld [vmem:[#allocation2 + $0x308] sm:$0xff]  ;;  %v580_v5 = vld [vmem:[#allocation2 + $0x300] sm:$0xff]  ;;  %v498_v43 = vld [vmem:[#allocation2 + $0x70] sm:$0xff] }
 0x183   :  { %v521_v6 = vld [vmem:[#allocation2 + $0x128] sm:$0xff]  ;;  %v520_v8 = vld [vmem:[#allocation2 + $0x120] sm:$0xff]  ;;  %v503_v45 = vld [vmem:[#allocation2 + $0x98] sm:$0xff] }
 0x184   :  { %621 = vmatpush1.bf16.msra.mxu1 %v500_v46  ;;  %v585_v7 = vld [vmem:[#allocation2 + $0x328] sm:$0xff]  ;;  %v584_v9 = vld [vmem:[#allocation2 + $0x320] sm:$0xff]  ;;  %v502_v46 = vld [vmem:[#allocation2 + $0x90] sm:$0xff] }
 0x185   :  { %662 = vmatpush1.bf16.msra.mxu0 %v564_v47  ;;  %622 = vmatprep.subr.bf16.mxu1 %v505_v48  ;;  %v525_v10 = vld [vmem:[#allocation2 + $0x148] sm:$0xff]  ;;  %v524_v51 = vld [vmem:[#allocation2 + $0x140] sm:$0xff]  ;;  %v507_v47 = vld [vmem:[#allocation2 + $0xb8] sm:$0xff] }
 0x186   :  { %663 = vmatprep.subr.bf16.mxu0 %v569_v49  ;;  %v589_v12 = vld [vmem:[#allocation2 + $0x348] sm:$0xff]  ;;  %v588_v55 = vld [vmem:[#allocation2 + $0x340] sm:$0xff]  ;;  %v506_v48 = vld [vmem:[#allocation2 + $0xb0] sm:$0xff] }
 0x187   :  { %v529_v13 = vld [vmem:[#allocation2 + $0x168] sm:$0xff]  ;;  %v528_v11 = vld [vmem:[#allocation2 + $0x160] sm:$0xff]  ;;  %v511_v49 = vld [vmem:[#allocation2 + $0xd8] sm:$0xff] }
 0x188   :  { %623 = vmatpush1.bf16.msra.mxu1 %v504_v50  ;;  %v593_v15 = vld [vmem:[#allocation2 + $0x368] sm:$0xff]  ;;  %v592_v14 = vld [vmem:[#allocation2 + $0x360] sm:$0xff]  ;;  %v515_v50 = vld [vmem:[#allocation2 + $0xf8] sm:$0xff] }
 0x189   :  { %664 = vmatpush1.bf16.msra.mxu0 %v568_v53  ;;  %624 = vmatprep.subr.bf16.mxu1 %v509_v58  ;;  %v533_v31 = vld [vmem:[#allocation2 + $0x188] sm:$0xff]  ;;  %v532_v18 = vld [vmem:[#allocation2 + $0x180] sm:$0xff]  ;;  %v514_v53 = vld [vmem:[#allocation2 + $0xf0] sm:$0xff] }
 0x18a   :  { %665 = vmatprep.subr.bf16.mxu0 %v573_v59  ;;  %v597_v16 = vld [vmem:[#allocation2 + $0x388] sm:$0xff]  ;;  %v596_v20 = vld [vmem:[#allocation2 + $0x380] sm:$0xff]  ;;  %v519_v58 = vld [vmem:[#allocation2 + $0x118] sm:$0xff] }
 0x18b   :  { %v537_v22 = vld [vmem:[#allocation2 + $0x1a8] sm:$0xff]  ;;  %v536_v26 = vld [vmem:[#allocation2 + $0x1a0] sm:$0xff]  ;;  %v518_v59 = vld [vmem:[#allocation2 + $0x110] sm:$0xff] }
 0x18c   :  { %625 = vmatpush1.bf16.msra.mxu1 %v508_v60  ;;  %v601_v25 = vld [vmem:[#allocation2 + $0x3a8] sm:$0xff]  ;;  %v600_v27 = vld [vmem:[#allocation2 + $0x3a0] sm:$0xff]  ;;  %v523_v60 = vld [vmem:[#allocation2 + $0x138] sm:$0xff] }
 0x18d   :  { %666 = vmatpush1.bf16.msra.mxu0 %v572_v61  ;;  %626 = vmatprep.subr.bf16.mxu1 %v513_v62  ;;  %v541_v28 = vld [vmem:[#allocation2 + $0x1c8] sm:$0xff]  ;;  %v540_v30 = vld [vmem:[#allocation2 + $0x1c0] sm:$0xff]  ;;  %v522_v61 = vld [vmem:[#allocation2 + $0x130] sm:$0xff] }
 0x18e   :  { %667 = vmatprep.subr.bf16.mxu0 %v577_v63  ;;  %v605_v29 = vld [vmem:[#allocation2 + $0x3c8] sm:$0xff]  ;;  %v604_v32 = vld [vmem:[#allocation2 + $0x3c0] sm:$0xff]  ;;  %v527_v62 = vld [vmem:[#allocation2 + $0x158] sm:$0xff] }
 0x18f   :  { %v545_v33 = vld [vmem:[#allocation2 + $0x1e8] sm:$0xff]  ;;  %v544_v35 = vld [vmem:[#allocation2 + $0x1e0] sm:$0xff]  ;;  %v526_v63 = vld [vmem:[#allocation2 + $0x150] sm:$0xff] }
 0x190   :  { %627 = vmatpush1.bf16.msra.mxu1 %v512_v0  ;;  %v609_v34 = vld [vmem:[#allocation2 + $0x3e8] sm:$0xff]  ;;  %v608_v37 = vld [vmem:[#allocation2 + $0x3e0] sm:$0xff]  ;;  %v531_v0 = vld [vmem:[#allocation2 + $0x178] sm:$0xff] }
 0x191   :  { %668 = vmatpush1.bf16.msra.mxu0 %v576_v1  ;;  %628 = vmatprep.subr.bf16.mxu1 %v517_v2  ;;  %v530_v1 = vld [vmem:[#allocation2 + $0x170] sm:$0xff]  ;;  %v535_v2 = vld [vmem:[#allocation2 + $0x198] sm:$0xff] }
 0x192   :  { %669 = vmatprep.subr.bf16.mxu0 %v581_v3  ;;  %v534_v3 = vld [vmem:[#allocation2 + $0x190] sm:$0xff] }
 0x194   :  { %629 = vmatpush1.bf16.msra.mxu1 %v516_v4  ;;  %v539_v4 = vld [vmem:[#allocation2 + $0x1b8] sm:$0xff] }
 0x195   :  { %670 = vmatpush1.bf16.msra.mxu0 %v580_v5  ;;  %630 = vmatprep.subr.bf16.mxu1 %v521_v6  ;;  %v538_v5 = vld [vmem:[#allocation2 + $0x1b0] sm:$0xff]  ;;  %v543_v6 = vld [vmem:[#allocation2 + $0x1d8] sm:$0xff] }
 0x196   :  { %671 = vmatprep.subr.bf16.mxu0 %v585_v7  ;;  %v542_v7 = vld [vmem:[#allocation2 + $0x1d0] sm:$0xff] }
 0x198   :  { %631 = vmatpush1.bf16.msra.mxu1 %v520_v8  ;;  %v547_v8 = vld [vmem:[#allocation2 + $0x1f8] sm:$0xff] }
 0x199   :  { %672 = vmatpush1.bf16.msra.mxu0 %v584_v9  ;;  %632 = vmatprep.subr.bf16.mxu1 %v525_v10  ;;  %v546_v9 = vld [vmem:[#allocation2 + $0x1f0] sm:$0xff]  ;;  %v551_v10 = vld [vmem:[#allocation2 + $0x218] sm:$0xff] }
 0x19a   :  { %673 = vmatprep.subr.bf16.mxu0 %v589_v12  ;;  %v550_v12 = vld [vmem:[#allocation2 + $0x210] sm:$0xff] }
 0x19c   :  { %633 = vmatpush1.bf16.msra.mxu1 %v524_v51  ;;  %v555_v51 = vld [vmem:[#allocation2 + $0x238] sm:$0xff] }
 0x19d   :  { %674 = vmatpush1.bf16.msra.mxu0 %v588_v55  ;;  %634 = vmatprep.subr.bf16.mxu1 %v529_v13  ;;  %v554_v55 = vld [vmem:[#allocation2 + $0x230] sm:$0xff]  ;;  %v559_v13 = vld [vmem:[#allocation2 + $0x258] sm:$0xff] }
 0x19e   :  { %675 = vmatprep.subr.bf16.mxu0 %v593_v15  ;;  %v558_v15 = vld [vmem:[#allocation2 + $0x250] sm:$0xff] }
 0x1a0   :  { %635 = vmatpush1.bf16.msra.mxu1 %v528_v11  ;;  %v563_v11 = vld [vmem:[#allocation2 + $0x278] sm:$0xff] }
 0x1a1   :  { %676 = vmatpush1.bf16.msra.mxu0 %v592_v14  ;;  %636 = vmatprep.subr.bf16.mxu1 %v533_v31  ;;  %v562_v14 = vld [vmem:[#allocation2 + $0x270] sm:$0xff]  ;;  %v567_v31 = vld [vmem:[#allocation2 + $0x298] sm:$0xff] }
 0x1a2   :  { %677 = vmatprep.subr.bf16.mxu0 %v597_v16  ;;  %v566_v16 = vld [vmem:[#allocation2 + $0x290] sm:$0xff] }
 0x1a4   :  { %637 = vmatpush1.bf16.msra.mxu1 %v532_v18  ;;  %v571_v18 = vld [vmem:[#allocation2 + $0x2b8] sm:$0xff] }
 0x1a5   :  { %678 = vmatpush1.bf16.msra.mxu0 %v596_v20  ;;  %638 = vmatprep.subr.bf16.mxu1 %v537_v22  ;;  %v570_v20 = vld [vmem:[#allocation2 + $0x2b0] sm:$0xff]  ;;  %v575_v22 = vld [vmem:[#allocation2 + $0x2d8] sm:$0xff] }
 0x1a6   :  { %679 = vmatprep.subr.bf16.mxu0 %v601_v25  ;;  %v579_v25 = vld [vmem:[#allocation2 + $0x2f8] sm:$0xff] }
 0x1a8   :  { %639 = vmatpush1.bf16.msra.mxu1 %v536_v26  ;;  %v578_v26 = vld [vmem:[#allocation2 + $0x2f0] sm:$0xff] }
 0x1a9   :  { %680 = vmatpush1.bf16.msra.mxu0 %v600_v27  ;;  %640 = vmatprep.subr.bf16.mxu1 %v541_v28  ;;  %v583_v27 = vld [vmem:[#allocation2 + $0x318] sm:$0xff]  ;;  %v582_v28 = vld [vmem:[#allocation2 + $0x310] sm:$0xff] }
 0x1aa   :  { %681 = vmatprep.subr.bf16.mxu0 %v605_v29  ;;  %v587_v29 = vld [vmem:[#allocation2 + $0x338] sm:$0xff] }
 0x1ac   :  { %641 = vmatpush1.bf16.msra.mxu1 %v540_v30  ;;  %v586_v30 = vld [vmem:[#allocation2 + $0x330] sm:$0xff] }
 0x1ad   :  { %682 = vmatpush1.bf16.msra.mxu0 %v604_v32  ;;  %642 = vmatprep.subr.bf16.mxu1 %v545_v33  ;;  %v591_v32 = vld [vmem:[#allocation2 + $0x358] sm:$0xff]  ;;  %v590_v33 = vld [vmem:[#allocation2 + $0x350] sm:$0xff] }
 0x1ae   :  { %683 = vmatprep.subr.bf16.mxu0 %v609_v34  ;;  %v595_v34 = vld [vmem:[#allocation2 + $0x378] sm:$0xff] }
 0x1b0   :  { %643 = vmatpush1.bf16.msra.mxu1 %v544_v35  ;;  %v594_v35 = vld [vmem:[#allocation2 + $0x370] sm:$0xff] }
 0x1b1   :  { %684 = vmatpush1.bf16.msra.mxu0 %v608_v37  ;;  %694 = vmatprep.subr.bf16.mxu1 %v487_v38  ;;  %v599_v37 = vld [vmem:[#allocation2 + $0x398] sm:$0xff]  ;;  %v598_v38 = vld [vmem:[#allocation2 + $0x390] sm:$0xff] }
 0x1b3   :  { %645 = vmatmul.mubr.bf16.vlgmr.msra.gmra.mrb[0].mxu1 %v1757_v39 }
 0x1b4   :  { %686 = vmatmul.mubr.bf16.vlgmr.msra.gmra.mrb[8].mxu0 %v1762_v40  ;;  %695 = vmatpush1.bf16.msra.mxu1 %v486_v41  ;;  %v602_v41 = vld [vmem:[#allocation2 + $0x3b0] sm:$0xff] }
 0x1b5   :  { %726 = vmatprep.mubr.bf16.mxu1 %v1748_v23  ;;  %696 = vmatprep.subr.bf16.mxu1 %v491_v42  ;;  %v510_v23 = vld [vmem:[#allocation2 + $0xd0] sm:$0xff]  ;;  %v607_v42 = vld [vmem:[#allocation2 + $0x3d8] sm:$0xff] }
 0x1b8   :  { %697 = vmatpush1.bf16.msra.mxu1 %v490_v36  ;;  %v606_v36 = vld [vmem:[#allocation2 + $0x3d0] sm:$0xff] }
 0x1b9   :  { %698 = vmatprep.subr.bf16.mxu1 %v495_v19  ;;  %v611_v19 = vld [vmem:[#allocation2 + $0x3f8] sm:$0xff] }
 0x1bc   :  { %699 = vmatpush1.bf16.msra.mxu1 %v494_v17  ;;  %v610_v17 = vld [vmem:[#allocation2 + $0x3f0] sm:$0xff] }
 0x1bd   :  { %700 = vmatprep.subr.bf16.mxu1 %v499_v21 }
 0x1c0   :  { %701 = vmatpush1.bf16.msra.mxu1 %v498_v43 }
 0x1c1   :  { %702 = vmatprep.subr.bf16.mxu1 %v503_v45 }
 0x1c4   :  { %703 = vmatpush1.bf16.msra.mxu1 %v502_v46 }
 0x1c5   :  { %704 = vmatprep.subr.bf16.mxu1 %v507_v47 }
 0x1c8   :  { %705 = vmatpush1.bf16.msra.mxu1 %v506_v48 }
 0x1c9   :  { %706 = vmatprep.subr.bf16.mxu1 %v511_v49 }
 0x1cc   :  { %707 = vmatpush1.bf16.msra.mxu1 %v510_v23 }
 0x1cd   :  { %708 = vmatprep.subr.bf16.mxu1 %v515_v50 }
 0x1d0   :  { %709 = vmatpush1.bf16.msra.mxu1 %v514_v53 }
 0x1d1   :  { %710 = vmatprep.subr.bf16.mxu1 %v519_v58 }
 0x1d4   :  { %711 = vmatpush1.bf16.msra.mxu1 %v518_v59 }
 0x1d5   :  { %712 = vmatprep.subr.bf16.mxu1 %v523_v60 }
 0x1d8   :  { %713 = vmatpush1.bf16.msra.mxu1 %v522_v61 }
 0x1d9   :  { %714 = vmatprep.subr.bf16.mxu1 %v527_v62 }
 0x1dc   :  { %715 = vmatpush1.bf16.msra.mxu1 %v526_v63 }
 0x1dd   :  { %716 = vmatprep.subr.bf16.mxu1 %v531_v0 }
 0x1e0   :  { %717 = vmatpush1.bf16.msra.mxu1 %v530_v1 }
 0x1e1   :  { %718 = vmatprep.subr.bf16.mxu1 %v535_v2 }
 0x1e4   :  { %719 = vmatpush1.bf16.msra.mxu1 %v534_v3 }
 0x1e5   :  { %720 = vmatprep.subr.bf16.mxu1 %v539_v4 }
 0x1e8   :  { %721 = vmatpush1.bf16.msra.mxu1 %v538_v5 }
 0x1e9   :  { %722 = vmatprep.subr.bf16.mxu1 %v543_v6 }
 0x1ec   :  { %723 = vmatpush1.bf16.msra.mxu1 %v542_v7 }
 0x1ed   :  { %724 = vmatprep.subr.bf16.mxu1 %v547_v8 }
 0x1f0   :  { %725 = vmatpush1.bf16.msra.mxu1 %v546_v9 }
 0x1f1   :  { %735 = vmatprep.subr.bf16.mxu1 %v551_v10 }
 0x1f3   :  { %727 = vmatmul.mubr.bf16.vlgmr.msra.gmra.mrb[4].mxu1 %v1757_v39  ;;  %v603_v39 = vld [vmem:[#allocation2 + $0x3b8] sm:$0xff] }
 0x1f4   :  { %736 = vmatpush1.bf16.msra.mxu1 %v550_v12  ;;  %767 = vmatprep.mubr.bf16.mxu1 %v1750_v24  ;;  %v574_v24 = vld [vmem:[#allocation2 + $0x2d0] sm:$0xff] }
 0x1f5   :  { %737 = vmatprep.subr.bf16.mxu1 %v555_v51 }
 0x1f8   :  { %738 = vmatpush1.bf16.msra.mxu1 %v554_v55 }
 0x1f9   :  { %739 = vmatprep.subr.bf16.mxu1 %v559_v13 }
 0x1fc   :  { %740 = vmatpush1.bf16.msra.mxu1 %v558_v15 }
 0x1fd   :  { %741 = vmatprep.subr.bf16.mxu1 %v563_v11 }
 0x200   :  { %742 = vmatpush1.bf16.msra.mxu1 %v562_v14 }
 0x201   :  { %743 = vmatprep.subr.bf16.mxu1 %v567_v31 }
 0x204   :  { %744 = vmatpush1.bf16.msra.mxu1 %v566_v16 }
 0x205   :  { %745 = vmatprep.subr.bf16.mxu1 %v571_v18 }
 0x208   :  { %746 = vmatpush1.bf16.msra.mxu1 %v570_v20 }
 0x209   :  { %747 = vmatprep.subr.bf16.mxu1 %v575_v22 }
 0x20c   :  { %748 = vmatpush1.bf16.msra.mxu1 %v574_v24 }
 0x20d   :  { %749 = vmatprep.subr.bf16.mxu1 %v579_v25 }
 0x210   :  { %750 = vmatpush1.bf16.msra.mxu1 %v578_v26 }
 0x211   :  { %751 = vmatprep.subr.bf16.mxu1 %v583_v27 }
 0x214   :  { %752 = vmatpush1.bf16.msra.mxu1 %v582_v28 }
 0x215   :  { %753 = vmatprep.subr.bf16.mxu1 %v587_v29 }
 0x218   :  { %754 = vmatpush1.bf16.msra.mxu1 %v586_v30 }
 0x219   :  { %755 = vmatprep.subr.bf16.mxu1 %v591_v32 }
 0x21c   :  { %756 = vmatpush1.bf16.msra.mxu1 %v590_v33 }
 0x21d   :  { %757 = vmatprep.subr.bf16.mxu1 %v595_v34 }
 0x220   :  { %758 = vmatpush1.bf16.msra.mxu1 %v594_v35 }
 0x221   :  { %759 = vmatprep.subr.bf16.mxu1 %v599_v37 }
 0x224   :  { %760 = vmatpush1.bf16.msra.mxu1 %v598_v38 }
 0x225   :  { %761 = vmatprep.subr.bf16.mxu1 %v603_v39 }
 0x228   :  { %762 = vmatpush1.bf16.msra.mxu1 %v602_v41 }
 0x229   :  { %763 = vmatprep.subr.bf16.mxu1 %v607_v42 }
 0x22c   :  { %764 = vmatpush1.bf16.msra.mxu1 %v606_v36 }
 0x22d   :  { %765 = vmatprep.subr.bf16.mxu1 %v611_v19 }
 0x230   :  { %766 = vmatpush1.bf16.msra.mxu1 %v610_v17 }
 0x233   :  { %768 = vmatmul.mubr.bf16.vlgmr.msra.gmra.mrb[4].mxu1 %v1762_v40 }
 0x286   :  { %v646_v21 = vpop.f32.mrb[0].mxu1 }
 0x287   :  { %v687_v43 = vpop.f32.mrb[8].mxu0  ;;  %v648_v46 = vpop.f32.mrb[1].mxu1 }
 0x288   :  { %v1770_v45 = vadd.f32 %v687_v43, %v646_v21  ;;  %v689_v47 = vpop.f32.mrb[9].mxu0  ;;  %v650_v49 = vpop.f32.mrb[2].mxu1 }
 0x289   :  { %v1772_v48 = vadd.f32 %v689_v47, %v648_v46  ;;  %v691_v23 = vpop.f32.mrb[10].mxu0  ;;  %v651_v58 = vpop.f32.mrb[3].mxu1 }
 0x28a   :  { %v780_v50 = vrot.slane %v1770_v45, 4  ;;  %v808_v53 = vmul.f32 %v1770_v45, %v1770_v45  ;;  %v692_v59 = vpop.f32.mrb[11].mxu0 }
 0x28b   :  { %v786_v60 = vrot.slane %v1772_v48, 4  ;;  %v809_v40 = vmul.f32 %v1772_v48, %v1772_v48 }
 0x28c   :  { %v781_v61 = vadd.f32 %v780_v50, %v1770_v45  ;;  %v812_v62 = vrot.slane %v808_v53, 4 }
 0x28d   :  { %v787_v63 = vadd.f32 %v786_v60, %v1772_v48  ;;  %v818_v0 = vrot.slane %v809_v40, 4 }
 0x28e   :  { %v782_v1 = vrot.slane %v781_v61, 2  ;;  %v813_v2 = vadd.f32 %v812_v62, %v808_v53 }
 0x28f   :  { %v788_v3 = vrot.slane %v787_v63, 2  ;;  %v819_v4 = vadd.f32 %v818_v0, %v809_v40 }
 0x290   :  { %v783_v5 = vadd.f32 %v782_v1, %v781_v61  ;;  %v814_v6 = vrot.slane %v813_v2, 2 }
 0x291   :  { %v789_v7 = vadd.f32 %v788_v3, %v787_v63  ;;  %v820_v8 = vrot.slane %v819_v4, 2 }
 0x292   :  { %v784_v9 = vrot.slane %v783_v5, 1  ;;  %v815_v10 = vadd.f32 %v814_v6, %v813_v2 }
 0x293   :  { %v790_v12 = vrot.slane %v789_v7, 1  ;;  %v821_v51 = vadd.f32 %v820_v8, %v819_v4 }
 0x294   :  { %v785_v55 = vadd.f32 %v784_v9, %v783_v5  ;;  %v816_v13 = vrot.slane %v815_v10, 1 }
 0x295   :  { %v791_v15 = vadd.f32 %v790_v12, %v789_v7  ;;  %v822_v11 = vrot.slane %v821_v51, 1 }
 0x296   :  { %v1782_v14 = vmul.f32 0.125, %v785_v55  ;;  %v817_v31 = vadd.f32 %v816_v13, %v815_v10 }
 0x297   :  { %v1784_v16 = vmul.f32 0.125, %v791_v15  ;;  %v823_v18 = vadd.f32 %v822_v11, %v821_v51 }
 0x298   :  { %v836_v20 = vmul.f32 0.125, %v817_v31  ;;  %v840_v22 = vmul.f32 %v1782_v14, %v1782_v14 }
 0x299   :  { %v837_v24 = vmul.f32 0.125, %v823_v18  ;;  %v841_v25 = vmul.f32 %v1784_v16, %v1784_v16 }
 0x29a   :  { %v844_v26 = vsub.f32 %v836_v20, %v840_v22 }
 0x29b   :  { %v845_v27 = vsub.f32 %v837_v24, %v841_v25 }
 0x29c   :  { %v848_v28 = vmax.f32 %v844_v26, 0.0 }
 0x29d   :  { %v849_v29 = vmax.f32 %v845_v27, 0.0 }
 0x29e   :  { %v852_v30 = vadd.f32 1e-05, %v848_v28  ;;  %v777_v28 = vld [vmem:[#allocation11 + $0x2] ss:$8 sm:$0xf] }
 0x29f   :  { %v853_v32 = vadd.f32 1e-05, %v849_v29 }
 0x2a0   :  { %1432 = vrsqrt.f32 %v852_v30 }
 0x2a1   :  { %1434 = vrsqrt.f32 %v853_v32 }
 0x2aa   :  { %v1433_v33 = vpop.eup %1432 }
 0x2ab   :  { %v1435_v34 = vpop.eup %1434 }
 0x2ac   :  { %v864_v35 = vcombine.low %v1433_v33, %v1435_v34 }
 0x2ae   :  { %v872_v25 = vrot.slane %v864_v35, %v1712_v44 }
 0x306   :  { %v1790_v37 = vpop.f32.mrb[4].mxu1 }
 0x307   :  { %v792_v38 = vrot.slane %v1790_v37, 4  ;;  %v810_v39 = vmul.f32 %v1790_v37, %v1790_v37  ;;  %v771_v41 = vpop.f32.mrb[5].mxu1 }
 0x308   :  { %v798_v42 = vrot.slane %v771_v41, 4  ;;  %v811_v36 = vmul.f32 %v771_v41, %v771_v41  ;;  %v773_v19 = vpop.f32.mrb[6].mxu1 }
 0x309   :  { %v793_v17 = vadd.f32 %v792_v38, %v1790_v37  ;;  %v824_v21 = vrot.slane %v810_v39, 4  ;;  %v774_v43 = vpop.f32.mrb[7].mxu1 }
 0x30a   :  { %v799_v46 = vadd.f32 %v798_v42, %v771_v41  ;;  %v830_v47 = vrot.slane %v811_v36, 4 }
 0x30b   :  { %v794_v49 = vrot.slane %v793_v17, 2  ;;  %v825_v23 = vadd.f32 %v824_v21, %v810_v39 }
 0x30c   :  { %v800_v50 = vrot.slane %v799_v46, 2  ;;  %v831_v53 = vadd.f32 %v830_v47, %v811_v36 }
 0x30d   :  { %v795_v58 = vadd.f32 %v794_v49, %v793_v17  ;;  %v826_v59 = vrot.slane %v825_v23, 2 }
 0x30e   :  { %v801_v60 = vadd.f32 %v800_v50, %v799_v46  ;;  %v832_v40 = vrot.slane %v831_v53, 2 }
 0x30f   :  { %v796_v61 = vrot.slane %v795_v58, 1  ;;  %v827_v62 = vadd.f32 %v826_v59, %v825_v23 }
 0x310   :  { %v802_v63 = vrot.slane %v801_v60, 1  ;;  %v833_v0 = vadd.f32 %v832_v40, %v831_v53  ;;  %v779_v53 = vld [vmem:[#allocation11 + $0x3] ss:$8 sm:$0xf] }
 0x311   :  { %v797_v1 = vadd.f32 %v796_v61, %v795_v58  ;;  %v828_v2 = vrot.slane %v827_v62, 1 }
 0x312   :  { %v803_v3 = vadd.f32 %v802_v63, %v801_v60  ;;  %v834_v4 = vrot.slane %v833_v0, 1 }
 0x313   :  { %v806_v5 = vmul.f32 0.125, %v797_v1  ;;  %v829_v6 = vadd.f32 %v828_v2, %v827_v62 }
 0x314   :  { %v807_v7 = vmul.f32 0.125, %v803_v3  ;;  %v835_v8 = vadd.f32 %v834_v4, %v833_v0 }
 0x315   :  { %v838_v9 = vmul.f32 0.125, %v829_v6  ;;  %v842_v10 = vmul.f32 %v806_v5, %v806_v5 }
 0x316   :  { %v839_v12 = vmul.f32 0.125, %v835_v8  ;;  %v843_v51 = vmul.f32 %v807_v7, %v807_v7 }
 0x317   :  { %v846_v55 = vsub.f32 %v838_v9, %v842_v10 }
 0x318   :  { %v847_v13 = vsub.f32 %v839_v12, %v843_v51 }
 0x319   :  { %v850_v15 = vmax.f32 %v846_v55, 0.0 }
 0x31a   :  { %v851_v11 = vmax.f32 %v847_v13, 0.0 }
 0x31b   :  { %v854_v31 = vadd.f32 1e-05, %v850_v15 }
 0x31c   :  { %v855_v18 = vadd.f32 1e-05, %v851_v11 }
 0x31d   :  { %1436 = vrsqrt.f32 %v854_v31 }
 0x31e   :  { %1438 = vrsqrt.f32 %v855_v18 }
 0x327   :  { %v1437_v20 = vpop.eup %1436 }
 0x328   :  { %v1439_v22 = vpop.eup %1438 }
 0x329   :  { %v865_v24 = vcombine.low %v1437_v20, %v1439_v22 }
 0x32b   :  { %v879_v26 = vrot.slane %v865_v24, %v1712_v44 }
 0x32d   :  { %v880_v27 = vcombine.low %v872_v25, %v879_v26 }
 0x32f   :  { %v887_v29 = vrot.slane %v880_v27, %v1712_v44 }
 0x331   :  { %v889_v30 = vmul.f32 %v887_v29, %v777_v28 }
 0x333   :  { %v894_v32 = vrot.slane %v889_v30, %v1716_v52  ;;  %v898_v33 = vrot.slane %v889_v30, %v1719_v54  ;;  %v902_v34 = vrot.slane %v889_v30, %v1721_v56  ;;  %v906_v38 = vrot.slane %v889_v30, %v1723_v57 }
 0x335   :  { %v911_v39 = vmul.f32 %v894_v32, %v1782_v14  ;;  %v912_v42 = vmul.f32 %v898_v33, %v1784_v16  ;;  %v913_v35 = vmul.f32 %v902_v34, %v806_v5  ;;  %v914_v36 = vmul.f32 %v906_v38, %v807_v7 }
 0x336   :  { %v945_v19 = vmul.f32 %v894_v32, %v1770_v45  ;;  %v946_v17 = vmul.f32 %v898_v33, %v1772_v48  ;;  %v947_v21 = vmul.f32 %v902_v34, %v1790_v37  ;;  %v948_v43 = vmul.f32 %v906_v38, %v771_v41 }
 0x337   :  { %v919_v46 = vcombine.low %v911_v39, %v912_v42  ;;  %v920_v47 = vcombine.low %v913_v35, %v914_v36 }
 0x339   :  { %v927_v49 = vrot.slane %v919_v46, %v1712_v44  ;;  %v934_v23 = vrot.slane %v920_v47, %v1712_v44 }
 0x33b   :  { %v935_v50 = vcombine.low %v927_v49, %v934_v23 }
 0x33d   :  { %v942_v14 = vrot.slane %v935_v50, %v1712_v44 }
 0x33f   :  { %v944_v16 = vsub.f32 %v779_v53, %v942_v14 }
 0x341   :  { %v953_v58 = vrot.slane %v944_v16, %v1716_v52  ;;  %v957_v45 = vrot.slane %v944_v16, %v1719_v54  ;;  %v961_v48 = vrot.slane %v944_v16, %v1721_v56  ;;  %v965_v37 = vrot.slane %v944_v16, %v1723_v57 }
 0x343   :  { %v1815_v41 = vadd.f32 %v953_v58, %v945_v19  ;;  %v971_v59 = vadd.f32 %v957_v45, %v946_v17  ;;  %v1817_v60 = vadd.f32 %v961_v48, %v947_v21  ;;  %v1819_v40 = vadd.f32 %v965_v37, %v948_v43 }
 0x345   :  { %v974_v61 = vmax.f32 %v1815_v41, 0.0  ;;  %v975_v62 = vmax.f32 %v971_v59, 0.0  ;;  %v976_v63 = vmax.f32 %v1817_v60, 0.0  ;;  %v977_v0 = vmax.f32 %v1819_v40, 0.0 }
 0x346   :  { %1560 = dma.done.wait [#allocation5 + $0x1], 8192 }
 0x347   :  { %1561 = vsyncadd [#allocation5 + $0x1], 4294959104  ;;  %v982_v1 = vpack.c.bf16 %v975_v62, %v975_v62  ;;  %v986_v56 = vld [vmem:[#allocation3 + $0x8] sm:$0xff]  ;;  %v985_v57 = vld [vmem:[#allocation3] sm:$0xff]  ;;  %v981_v42 = vpack.c.bf16 %v974_v61, %v974_v61  ;;  %v984_v35 = vpack.c.bf16 %v977_v0, %v977_v0 }
 0x348   :  { %v988_v2 = vld [vmem:[#allocation3 + $0x18] sm:$0xff]  ;;  %1049 = vmatprep.subr.bf16.mxu0 %v986_v56  ;;  %v987_v3 = vld [vmem:[#allocation3 + $0x10] sm:$0xff]  ;;  %v990_v4 = vld [vmem:[#allocation3 + $0x28] sm:$0xff] }
 0x349   :  { %1081 = vmatprep.mubr.bf16.mxu0 %v982_v1  ;;  %1050 = vmatpush1.bf16.msra.mxu0 %v985_v57  ;;  %v989_v5 = vld [vmem:[#allocation3 + $0x20] sm:$0xff]  ;;  %v992_v6 = vld [vmem:[#allocation3 + $0x38] sm:$0xff]  ;;  %v991_v7 = vld [vmem:[#allocation3 + $0x30] sm:$0xff] }
 0x34a   :  { %1051 = vmatprep.subr.bf16.mxu0 %v988_v2  ;;  %v994_v8 = vld [vmem:[#allocation3 + $0x48] sm:$0xff]  ;;  %v993_v9 = vld [vmem:[#allocation3 + $0x40] sm:$0xff]  ;;  %v996_v10 = vld [vmem:[#allocation3 + $0x58] sm:$0xff] }
 0x34b   :  { %v995_v12 = vld [vmem:[#allocation3 + $0x50] sm:$0xff]  ;;  %v998_v51 = vld [vmem:[#allocation3 + $0x68] sm:$0xff]  ;;  %v997_v55 = vld [vmem:[#allocation3 + $0x60] sm:$0xff] }
 0x34c   :  { %v1000_v13 = vld [vmem:[#allocation3 + $0x78] sm:$0xff]  ;;  %v999_v15 = vld [vmem:[#allocation3 + $0x70] sm:$0xff]  ;;  %v1002_v11 = vld [vmem:[#allocation3 + $0x88] sm:$0xff] }
 0x34d   :  { %1052 = vmatpush1.bf16.msra.mxu0 %v987_v3  ;;  %v1001_v31 = vld [vmem:[#allocation3 + $0x80] sm:$0xff]  ;;  %v1004_v18 = vld [vmem:[#allocation3 + $0x98] sm:$0xff]  ;;  %v1003_v20 = vld [vmem:[#allocation3 + $0x90] sm:$0xff] }
 0x34e   :  { %1053 = vmatprep.subr.bf16.mxu0 %v990_v4  ;;  %v1006_v22 = vld [vmem:[#allocation3 + $0xa8] sm:$0xff]  ;;  %v1005_v24 = vld [vmem:[#allocation3 + $0xa0] sm:$0xff]  ;;  %v1008_v25 = vld [vmem:[#allocation3 + $0xb8] sm:$0xff] }
 0x34f   :  { %v1007_v26 = vld [vmem:[#allocation3 + $0xb0] sm:$0xff]  ;;  %v1010_v27 = vld [vmem:[#allocation3 + $0xc8] sm:$0xff]  ;;  %v1009_v28 = vld [vmem:[#allocation3 + $0xc0] sm:$0xff] }
 0x350   :  { %v1012_v29 = vld [vmem:[#allocation3 + $0xd8] sm:$0xff]  ;;  %v1011_v30 = vld [vmem:[#allocation3 + $0xd0] sm:$0xff]  ;;  %v1014_v32 = vld [vmem:[#allocation3 + $0xe8] sm:$0xff] }
 0x351   :  { %1054 = vmatpush1.bf16.msra.mxu0 %v989_v5  ;;  %v1013_v33 = vld [vmem:[#allocation3 + $0xe0] sm:$0xff]  ;;  %v1016_v34 = vld [vmem:[#allocation3 + $0xf8] sm:$0xff]  ;;  %v1015_v38 = vld [vmem:[#allocation3 + $0xf0] sm:$0xff] }
 0x352   :  { %1055 = vmatprep.subr.bf16.mxu0 %v992_v6  ;;  %v1018_v39 = vld [vmem:[#allocation3 + $0x108] sm:$0xff]  ;;  %v1017_v36 = vld [vmem:[#allocation3 + $0x100] sm:$0xff]  ;;  %v1020_v19 = vld [vmem:[#allocation3 + $0x118] sm:$0xff] }
 0x353   :  { %v1019_v17 = vld [vmem:[#allocation3 + $0x110] sm:$0xff]  ;;  %v1022_v21 = vld [vmem:[#allocation3 + $0x128] sm:$0xff]  ;;  %v1021_v43 = vld [vmem:[#allocation3 + $0x120] sm:$0xff] }
 0x354   :  { %v1024_v46 = vld [vmem:[#allocation3 + $0x138] sm:$0xff]  ;;  %v1023_v47 = vld [vmem:[#allocation3 + $0x130] sm:$0xff]  ;;  %v1026_v49 = vld [vmem:[#allocation3 + $0x148] sm:$0xff] }
 0x355   :  { %1056 = vmatpush1.bf16.msra.mxu0 %v991_v7  ;;  %v1025_v23 = vld [vmem:[#allocation3 + $0x140] sm:$0xff]  ;;  %v1028_v50 = vld [vmem:[#allocation3 + $0x158] sm:$0xff]  ;;  %v1027_v53 = vld [vmem:[#allocation3 + $0x150] sm:$0xff]  ;;  %v983_v7 = vpack.c.bf16 %v976_v63, %v976_v63 }
 0x356   :  { %1057 = vmatprep.subr.bf16.mxu0 %v994_v8  ;;  %v1030_v14 = vld [vmem:[#allocation3 + $0x168] sm:$0xff]  ;;  %v1029_v16 = vld [vmem:[#allocation3 + $0x160] sm:$0xff]  ;;  %v1032_v58 = vld [vmem:[#allocation3 + $0x178] sm:$0xff] }
 0x357   :  { %v1031_v45 = vld [vmem:[#allocation3 + $0x170] sm:$0xff]  ;;  %v1034_v48 = vld [vmem:[#allocation3 + $0x188] sm:$0xff]  ;;  %v1033_v37 = vld [vmem:[#allocation3 + $0x180] sm:$0xff] }
 0x358   :  { %v1036_v41 = vld [vmem:[#allocation3 + $0x198] sm:$0xff]  ;;  %v1035_v59 = vld [vmem:[#allocation3 + $0x190] sm:$0xff]  ;;  %v1038_v40 = vld [vmem:[#allocation3 + $0x1a8] sm:$0xff] }
 0x359   :  { %1058 = vmatpush1.bf16.msra.mxu0 %v993_v9  ;;  %v1037_v61 = vld [vmem:[#allocation3 + $0x1a0] sm:$0xff]  ;;  %v1040_v62 = vld [vmem:[#allocation3 + $0x1b8] sm:$0xff]  ;;  %v1039_v0 = vld [vmem:[#allocation3 + $0x1b0] sm:$0xff] }
 0x35a   :  { %1059 = vmatprep.subr.bf16.mxu0 %v996_v10  ;;  %v1042_v1 = vld [vmem:[#allocation3 + $0x1c8] sm:$0xff]  ;;  %v1041_v56 = vld [vmem:[#allocation3 + $0x1c0] sm:$0xff]  ;;  %v1044_v57 = vld [vmem:[#allocation3 + $0x1d8] sm:$0xff] }
 0x35b   :  { %v1043_v2 = vld [vmem:[#allocation3 + $0x1d0] sm:$0xff]  ;;  %v1046_v3 = vld [vmem:[#allocation3 + $0x1e8] sm:$0xff]  ;;  %v1045_v4 = vld [vmem:[#allocation3 + $0x1e0] sm:$0xff] }
 0x35c   :  { %v1048_v5 = vld [vmem:[#allocation3 + $0x1f8] sm:$0xff]  ;;  %v1047_v6 = vld [vmem:[#allocation3 + $0x1f0] sm:$0xff] }
 0x35d   :  { %1060 = vmatpush1.bf16.msra.mxu0 %v995_v12 }
 0x35e   :  { %1061 = vmatprep.subr.bf16.mxu0 %v998_v51 }
 0x361   :  { %1062 = vmatpush1.bf16.msra.mxu0 %v997_v55 }
 0x362   :  { %1063 = vmatprep.subr.bf16.mxu0 %v1000_v13 }
 0x365   :  { %1064 = vmatpush1.bf16.msra.mxu0 %v999_v15 }
 0x366   :  { %1065 = vmatprep.subr.bf16.mxu0 %v1002_v11 }
 0x369   :  { %1066 = vmatpush1.bf16.msra.mxu0 %v1001_v31 }
 0x36a   :  { %1067 = vmatprep.subr.bf16.mxu0 %v1004_v18 }
 0x36d   :  { %1068 = vmatpush1.bf16.msra.mxu0 %v1003_v20 }
 0x36e   :  { %1069 = vmatprep.subr.bf16.mxu0 %v1006_v22 }
 0x371   :  { %1070 = vmatpush1.bf16.msra.mxu0 %v1005_v24 }
 0x372   :  { %1071 = vmatprep.subr.bf16.mxu0 %v1008_v25 }
 0x375   :  { %1072 = vmatpush1.bf16.msra.mxu0 %v1007_v26 }
 0x376   :  { %1073 = vmatprep.subr.bf16.mxu0 %v1010_v27 }
 0x379   :  { %1074 = vmatpush1.bf16.msra.mxu0 %v1009_v28 }
 0x37a   :  { %1075 = vmatprep.subr.bf16.mxu0 %v1012_v29 }
 0x37d   :  { %1076 = vmatpush1.bf16.msra.mxu0 %v1011_v30 }
 0x37e   :  { %1077 = vmatprep.subr.bf16.mxu0 %v1014_v32 }
 0x381   :  { %1078 = vmatpush1.bf16.msra.mxu0 %v1013_v33 }
 0x382   :  { %1079 = vmatprep.subr.bf16.mxu0 %v1016_v34 }
 0x385   :  { %1080 = vmatpush1.bf16.msra.mxu0 %v1015_v38 }
 0x386   :  { %1090 = vmatprep.subr.bf16.mxu0 %v1018_v39 }
 0x388   :  { %1082 = vmatmul.mubr.bf16.vlgmr.msra.gmra.mrb[12].mxu0 %v981_v42 }
 0x389   :  { %1091 = vmatpush1.bf16.msra.mxu0 %v1017_v36  ;;  %1122 = vmatprep.mubr.bf16.mxu0 %v984_v35 }
 0x38a   :  { %1092 = vmatprep.subr.bf16.mxu0 %v1020_v19 }
 0x38d   :  { %1093 = vmatpush1.bf16.msra.mxu0 %v1019_v17 }
 0x38e   :  { %1094 = vmatprep.subr.bf16.mxu0 %v1022_v21 }
 0x391   :  { %1095 = vmatpush1.bf16.msra.mxu0 %v1021_v43 }
 0x392   :  { %1096 = vmatprep.subr.bf16.mxu0 %v1024_v46 }
 0x395   :  { %1097 = vmatpush1.bf16.msra.mxu0 %v1023_v47 }
 0x396   :  { %1098 = vmatprep.subr.bf16.mxu0 %v1026_v49 }
 0x399   :  { %1099 = vmatpush1.bf16.msra.mxu0 %v1025_v23 }
 0x39a   :  { %1100 = vmatprep.subr.bf16.mxu0 %v1028_v50 }
 0x39d   :  { %1101 = vmatpush1.bf16.msra.mxu0 %v1027_v53 }
 0x39e   :  { %1102 = vmatprep.subr.bf16.mxu0 %v1030_v14 }
 0x3a1   :  { %1103 = vmatpush1.bf16.msra.mxu0 %v1029_v16 }
 0x3a2   :  { %1104 = vmatprep.subr.bf16.mxu0 %v1032_v58 }
 0x3a5   :  { %1105 = vmatpush1.bf16.msra.mxu0 %v1031_v45 }
 0x3a6   :  { %1106 = vmatprep.subr.bf16.mxu0 %v1034_v48 }
 0x3a9   :  { %1107 = vmatpush1.bf16.msra.mxu0 %v1033_v37 }
 0x3aa   :  { %1108 = vmatprep.subr.bf16.mxu0 %v1036_v41  ;;  %v1132_v41 = vld [vmem:[#allocation11 + $0x4] ss:$8 sm:$0x3] }
 0x3ad   :  { %1109 = vmatpush1.bf16.msra.mxu0 %v1035_v59 }
 0x3ae   :  { %1110 = vmatprep.subr.bf16.mxu0 %v1038_v40 }
 0x3b1   :  { %1111 = vmatpush1.bf16.msra.mxu0 %v1037_v61 }
 0x3b2   :  { %1112 = vmatprep.subr.bf16.mxu0 %v1040_v62 }
 0x3b5   :  { %1113 = vmatpush1.bf16.msra.mxu0 %v1039_v0 }
 0x3b6   :  { %1114 = vmatprep.subr.bf16.mxu0 %v1042_v1 }
 0x3b9   :  { %1115 = vmatpush1.bf16.msra.mxu0 %v1041_v56 }
 0x3ba   :  { %1116 = vmatprep.subr.bf16.mxu0 %v1044_v57 }
 0x3bd   :  { %1117 = vmatpush1.bf16.msra.mxu0 %v1043_v2 }
 0x3be   :  { %1118 = vmatprep.subr.bf16.mxu0 %v1046_v3 }
 0x3c1   :  { %1119 = vmatpush1.bf16.msra.mxu0 %v1045_v4  ;;  %v1134_v4 = vld [vmem:[#allocation11 + $0x5] ss:$8 sm:$0x3] }
 0x3c2   :  { %1120 = vmatprep.subr.bf16.mxu0 %v1048_v5 }
 0x3c5   :  { %1121 = vmatpush1.bf16.msra.mxu0 %v1047_v6 }
 0x3c8   :  { %1123 = vmatmul.mubr.bf16.vlgmr.msra.gmra.mrb[12].mxu0 %v983_v7 }
 0x49b   :  { %v1124_v8 = vpop.f32.mrb[12].mxu0 }
 0x49c   :  { %v1135_v9 = vrot.slane %v1124_v8, 4  ;;  %v1149_v10 = vmul.f32 %v1124_v8, %v1124_v8  ;;  %v1126_v12 = vpop.f32.mrb[13].mxu0 }
 0x49d   :  { %v1141_v51 = vrot.slane %v1126_v12, 4  ;;  %v1150_v55 = vmul.f32 %v1126_v12, %v1126_v12  ;;  %v1128_v13 = vpop.f32.mrb[14].mxu0 }
 0x49e   :  { %v1136_v15 = vadd.f32 %v1135_v9, %v1124_v8  ;;  %v1151_v11 = vrot.slane %v1149_v10, 4  ;;  %v1129_v31 = vpop.f32.mrb[15].mxu0 }
 0x49f   :  { %v1142_v18 = vadd.f32 %v1141_v51, %v1126_v12  ;;  %v1157_v20 = vrot.slane %v1150_v55, 4 }
 0x4a0   :  { %v1137_v22 = vrot.slane %v1136_v15, 2  ;;  %v1152_v24 = vadd.f32 %v1151_v11, %v1149_v10 }
 0x4a1   :  { %v1143_v25 = vrot.slane %v1142_v18, 2  ;;  %v1158_v60 = vadd.f32 %v1157_v20, %v1150_v55 }
 0x4a2   :  { %v1138_v26 = vadd.f32 %v1137_v22, %v1136_v15  ;;  %v1153_v63 = vrot.slane %v1152_v24, 2 }
 0x4a3   :  { %v1144_v27 = vadd.f32 %v1143_v25, %v1142_v18  ;;  %v1159_v28 = vrot.slane %v1158_v60, 2 }
 0x4a4   :  { %v1139_v29 = vrot.slane %v1138_v26, 1  ;;  %v1154_v30 = vadd.f32 %v1153_v63, %v1152_v24 }
 0x4a5   :  { %v1145_v32 = vrot.slane %v1144_v27, 1  ;;  %v1160_v33 = vadd.f32 %v1159_v28, %v1158_v60 }
 0x4a6   :  { %v1140_v34 = vadd.f32 %v1139_v29, %v1138_v26  ;;  %v1155_v38 = vrot.slane %v1154_v30, 1 }
 0x4a7   :  { %v1146_v39 = vadd.f32 %v1145_v32, %v1144_v27  ;;  %v1161_v42 = vrot.slane %v1160_v33, 1 }
 0x4a8   :  { %v1147_v35 = vmul.f32 0.125, %v1140_v34  ;;  %v1156_v36 = vadd.f32 %v1155_v38, %v1154_v30 }
 0x4a9   :  { %v1148_v19 = vmul.f32 0.125, %v1146_v39  ;;  %v1162_v17 = vadd.f32 %v1161_v42, %v1160_v33 }
 0x4aa   :  { %v1163_v21 = vmul.f32 0.125, %v1156_v36  ;;  %v1165_v43 = vmul.f32 %v1147_v35, %v1147_v35 }
 0x4ab   :  { %v1164_v46 = vmul.f32 0.125, %v1162_v17  ;;  %v1166_v47 = vmul.f32 %v1148_v19, %v1148_v19 }
 0x4ac   :  { %v1167_v49 = vsub.f32 %v1163_v21, %v1165_v43 }
 0x4ad   :  { %v1168_v23 = vsub.f32 %v1164_v46, %v1166_v47 }
 0x4ae   :  { %v1169_v50 = vmax.f32 %v1167_v49, 0.0 }
 0x4af   :  { %v1170_v53 = vmax.f32 %v1168_v23, 0.0 }
 0x4b0   :  { %v1171_v14 = vadd.f32 1e-05, %v1169_v50 }
 0x4b1   :  { %v1172_v16 = vadd.f32 1e-05, %v1170_v53 }
 0x4b2   :  { %1440 = vrsqrt.f32 %v1171_v14 }
 0x4b3   :  { %1442 = vrsqrt.f32 %v1172_v16 }
 0x4bc   :  { %v1441_v58 = vpop.eup %1440 }
 0x4bd   :  { %v1443_v45 = vpop.eup %1442 }
 0x4be   :  { %v1177_v48 = vcombine.low %v1441_v58, %v1443_v45 }
 0x4c0   :  { %v1184_v37 = vrot.slane %v1177_v48, %v1712_v44 }
 0x4c2   :  { %v1191_v59 = vrot.slane %v1184_v37, %v1712_v44 }
 0x4c4   :  { %v1193_v40 = vmul.f32 %v1191_v59, %v1132_v41 }
 0x4c6   :  { %v1198_v61 = vrot.slane %v1193_v40, %v1716_v52  ;;  %v1202_v62 = vrot.slane %v1193_v40, %v1719_v54 }
 0x4c8   :  { %v1205_v0 = vmul.f32 %v1198_v61, %v1147_v35  ;;  %v1206_v1 = vmul.f32 %v1202_v62, %v1148_v19  ;;  %v1226_v56 = vmul.f32 %v1198_v61, %v1124_v8  ;;  %v1227_v57 = vmul.f32 %v1202_v62, %v1126_v12 }
 0x4ca   :  { %v1209_v2 = vcombine.low %v1205_v0, %v1206_v1 }
 0x4cc   :  { %v1216_v3 = vrot.slane %v1209_v2, %v1712_v44 }
 0x4ce   :  { %v1223_v5 = vrot.slane %v1216_v3, %v1712_v44 }
 0x4d0   :  { %v1225_v6 = vsub.f32 %v1134_v4, %v1223_v5 }
 0x4d2   :  { %v1232_v7 = vrot.slane %v1225_v6, %v1716_v52  ;;  %v1236_v9 = vrot.slane %v1225_v6, %v1719_v54 }
 0x4d4   :  { %v1239_v10 = vadd.f32 %v1232_v7, %v1226_v56  ;;  %v1240_v51 = vadd.f32 %v1236_v9, %v1227_v57 }
 0x4d6   :  { %v1241_v55 = vmax.f32 %v1239_v10, 0.0  ;;  %v1242_v13 = vmax.f32 %v1240_v51, 0.0 }
 0x4d7   :  { %1562 = dma.done.wait [#allocation5 + $0x2], 2048 }
 0x4d8   :  { %1563 = vsyncadd [#allocation5 + $0x2], 4294965248  ;;  %v1248_v15 = vpack.c.bf16 %v1242_v13, %v1242_v13  ;;  %v1257_v8 = vld [vmem:[#allocation4 + $0x40] sm:$0xff]  ;;  %v1258_v11 = vld [vmem:[#allocation4 + $0x48] sm:$0xff]  ;;  %v1247_v28 = vpack.c.bf16 %v1241_v55, %v1241_v55  ;;  %s1585_s5 = smov [#allocation12]  }
 0x4d9   :  { %v1249_v12 = vld [vmem:[#allocation4] sm:$0xff]  ;;  %1360 = vmatprep.subr.bf16.mxu1 %v1257_v8  ;;  %v1250_v44 = vld [vmem:[#allocation4 + $0x8] sm:$0xff]  ;;  %v1259_v31 = vld [vmem:[#allocation4 + $0x50] sm:$0xff]  ;;  %s1313_s13 = sshll.u32 %s1585_s5, 4  ;;  %s1314_s13 = int_to_ptr.vmem [resolvable:$true] %s1313_s13 }
 0x4da   :  { %1298 = vmatprep.mubr.bf16.mxu1 %v1248_v15  ;;  %1361 = vmatpush3.bf16.msra.mxu1 %v1249_v12  ;;  %v1251_v52 = vld [vmem:[#allocation4 + $0x10] sm:$0xff]  ;;  %v1260_v54 = vld [vmem:[#allocation4 + $0x58] sm:$0xff]  ;;  %v1261_v20 = vld [vmem:[#allocation4 + $0x60] sm:$0xff]  ;;  %s1532_s15 = scalar_lea.vmem %s1314_s13, 128  ;;  %p1537_p5 = scmp.lt.s32.totalorder %s1314_s13, %s1314_s13 }
 0x4db   :  { %1362 = vmatprep.subr.bf16.mxu1 %v1258_v11  ;;  %v1252_v18 = vld [vmem:[#allocation4 + $0x18] sm:$0xff]  ;;  %v1253_v22 = vld [vmem:[#allocation4 + $0x20] sm:$0xff]  ;;  %v1262_v24 = vld [vmem:[#allocation4 + $0x68] sm:$0xff]  ;;  %p1533_p4 = scmp.ne.s32.totalorder %s1314_s13, %s1532_s15  ;;  %p1538_p6 = scmp.lt.s32.totalorder %s1532_s15, %s1532_s15 }
 0x4dc   :  { %v1254_v25 = vld [vmem:[#allocation4 + $0x28] sm:$0xff]  ;;  %v1263_v60 = vld [vmem:[#allocation4 + $0x70] sm:$0xff]  ;;  %v1264_v63 = vld [vmem:[#allocation4 + $0x78] sm:$0xff] }
 0x4dd   :  { %v1255_v26 = vld [vmem:[#allocation4 + $0x30] sm:$0xff]  ;;  %v1256_v27 = vld [vmem:[#allocation4 + $0x38] sm:$0xff]  ;;  %v1265_v30 = vld [vmem:[#allocation11 + $0x6] ss:$0 sm:$0xff]  ;;  %p1539_p7 = por %p1538_p6, %p1537_p5 }
 0x4de   :  { %1363 = vmatpush3.bf16.msra.mxu1 %v1250_v44 }
 0x4df   :  { %1364 = vmatprep.subr.bf16.mxu1 %v1259_v31  ;;  %p1540_p8 = pnand %p1539_p7, %p1533_p4 }
 0x4e2   :  { %1365 = vmatpush3.bf16.msra.mxu1 %v1251_v52 }
 0x4e3   :  { %1366 = vmatprep.subr.bf16.mxu1 %v1260_v54 }
 0x4e6   :  { %1367 = vmatpush3.bf16.msra.mxu1 %v1252_v18 }
 0x4e7   :  { %1368 = vmatprep.subr.bf16.mxu1 %v1261_v20 }
 0x4ea   :  { %1369 = vmatpush3.bf16.msra.mxu1 %v1253_v22 }
 0x4eb   :  { %1370 = vmatprep.subr.bf16.mxu1 %v1262_v24 }
 0x4ee   :  { %1371 = vmatpush3.bf16.msra.mxu1 %v1254_v25 }
 0x4ef   :  { %1372 = vmatprep.subr.bf16.mxu1 %v1263_v60 }
 0x4f2   :  { %1373 = vmatpush3.bf16.msra.mxu1 %v1255_v26 }
 0x4f3   :  { %1374 = vmatprep.subr.bf16.mxu1 %v1264_v63 }
 0x4f6   :  { %1375 = vmatpush3.bf16.msra.mxu1 %v1256_v27 }
 0x4f9   :  { %1299 = vmatmul.mubr.bf16.vlgmr.msra.gmra.mrb[8].mxu1 %v1247_v28 }
 0x5cc   :  { %v1376_v29 = vpop.f32.mrb[8].mxu1 }
 0x5cd   :  { %v1377_v32 = vpop.f32.mrb[9].mxu1 }
 0x5ce   :  { %v1378_v33 = vadd.f32 %v1377_v32, %v1376_v29  ;;  %v1379_v34 = vpop.f32.mrb[10].mxu1 }
 0x5cf   :  { %v1380_v38 = vpop.f32.mrb[11].mxu1 }
 0x5d0   :  { %v1301_v39 = vadd.f32 %v1378_v33, %v1265_v30 }
 0x5d2   :  { %1306 = vst [vmem:[#allocation12] sm:$0xff] %v1301_v39 }
 0x5d3   :  { %1543 = shalt.err (!%p1540_p8)
}
 0x5d4   :  { %s1544_s14 = scalar_lea.hbm %s1859_s6, 128 }
 0x5d5   :  { %p1545_p9 = scmp.ne.s32.totalorder %s1859_s6, %s1544_s14  ;;  %p1548_p10 = scmp.lt.u32.totalorder %s1544_s14, %s1859_s6 }
 0x5d7   :  { %p1550_p11 = pnand %p1548_p10, %p1545_p9 }
 0x5d9   :  { %1553 = shalt.err (!%p1550_p11)
}
 0x5da   :  { %1316 = dma.vmem_to_hbm [thread:$0]  %s1314_s13, 128, %s1859_s6, [#allocation8]  }
 0x5db   :  { %1564 = dma.done.wait [#allocation8], 128  }
 0x5dc   :  { %1565 = vsyncadd [#allocation8], 4294967168 }
 0x5dd   :  { %1320 = vsyncpa [#allocation7], 1 }
 0x5de   :  { %1321 = vsyncpa [#allocation10], 1 }
 0x5df   :  { %1322 = vsyncpa [#allocation8], 1 }
 0x5e0   :  { %1323 = vsyncmov [#allocation5] }
 0x5e3   :  { %s1324_s22 = vpop.sfrf %1323 }
 0x5e4   :  { %p1357_p12 = scmp.ne.s32.totalorder %s1324_s22, 0 }
 0x5e6   :  { %1328 = shalt.err (%p1357_p12)  }
 0x5e7   :  { %1330 = vsyncmov [#allocation5 + $0x1] }
 0x5ea   :  { %s1331_s23 = vpop.sfrf %1330 }
 0x5eb   :  { %p1358_p13 = scmp.ne.s32.totalorder %s1331_s23, 0 }
 0x5ed   :  { %1335 = shalt.err (%p1358_p13)  }
 0x5ee   :  { %1337 = vsyncmov [#allocation5 + $0x2] }
 0x5f1   :  { %s1338_s24 = vpop.sfrf %1337 }
 0x5f2   :  { %p1359_p0 = scmp.ne.s32.totalorder %s1338_s24, 0 }
 0x5f4   :  { %1342 = shalt.err (%p1359_p0)  }

</bundles_post_ra>
